<compile_context>
chip_gen: v5e
topology: v5e:2x2
jax: 0.10.0
libtpu: 0.0.40
codegen_flags: <defaults>
</compile_context>

<pallas_src>
import math

import jax
import jax.numpy as jnp
from jax.experimental import pallas as pl
from jax.experimental.pallas import tpu as pltpu


def _round_up(x, n):
    return (x + n - 1) // n * n


# --------------------------------------------------------------------------
# Small-table path: VMEM-resident table, one-hot MXU gather.
# --------------------------------------------------------------------------
def _embed_onehot_kernel(ids_ref, table_ref, o_ref):
    # ids_ref:   (tile_m, 1) int32, VMEM (current tile's token ids)
    # table_ref: (vocab, d_model) table, VMEM-resident across all grid steps
    # o_ref:     (tile_m, d_model) output tile
    tile_m, d_model = o_ref.shape
    vocab = table_ref.shape[0]

    ids = ids_ref[...]                                                # (tile_m, 1)
    cols = jax.lax.broadcasted_iota(jnp.int32, (tile_m, vocab), 1)
    one_hot = (ids == cols).astype(table_ref.dtype)                   # (tile_m, vocab)
    rows = jnp.dot(one_hot, table_ref[...],
                   preferred_element_type=jnp.float32,
                   precision=jax.lax.Precision.HIGHEST)               # exact gather
    scale = jnp.float32(math.sqrt(d_model))
    o_ref[...] = (rows * scale).astype(o_ref.dtype)


# --------------------------------------------------------------------------
# Large-table path: HBM row gather, DMA directly into the output tile.
# --------------------------------------------------------------------------
def _embed_gather_kernel(ids_ref, table_hbm, o_ref, sem):
    # ids_ref:   (m_pad,) int32 in SMEM (scalar prefetch; wrapper bounds its size)
    # table_hbm: (vocab, d_model) ref left in HBM (pl.ANY) -> manual row DMAs
    # o_ref:     (tile_m, d_model) output tile; gathered rows land here directly
    # sem:       single DMA semaphore shared by every row copy of this tile
    tile_m, d_model = o_ref.shape
    base = pl.program_id(0) * tile_m

    def start_row(j, carry):
        tok = ids_ref[base + j]
        pltpu.make_async_copy(table_hbm.at[tok], o_ref.at[j], sem).start()
        return carry

    jax.lax.fori_loop(0, tile_m, start_row, 0, unroll=8)

    def wait_row(j, carry):
        # Same shape/dtype as every started copy -> wait amounts balance.
        pltpu.make_async_copy(table_hbm.at[0], o_ref.at[j], sem).wait()
        return carry

    jax.lax.fori_loop(0, tile_m, wait_row, 0, unroll=8)

    scale = jnp.float32(math.sqrt(d_model))
    o_ref[...] = (o_ref[...].astype(jnp.float32) * scale).astype(o_ref.dtype)


# --------------------------------------------------------------------------
# Wrapper
# --------------------------------------------------------------------------
def input_embedding(ids, table, *, tile_m=None, force_gather=False):
    """ids: int array of token ids (any shape); table: (vocab, d_model).

    Returns table[ids] * sqrt(d_model), shaped ids.shape + (d_model,).
    """
    vocab, d_model = table.shape
    m = int(math.prod(ids.shape)) if ids.ndim else 1
    ids_flat = ids.reshape(m).astype(jnp.int32)

    itemsize = jnp.dtype(table.dtype).itemsize
    sublane = {4: 8, 2: 16, 1: 32}.get(itemsize, 8)

    # Generation-aware VMEM budget (v7x: 64 MiB/TC physical vs 128 MiB v5e/v6e).
    try:
        vmem_phys = int(pltpu.get_tpu_info().vmem_capacity_bytes)
    except Exception:
        vmem_phys = 64 << 20
    vmem_limit = int(min(vmem_phys // 2, 96 << 20))

    table_bytes = vocab * d_model * itemsize
    small_table = ((not force_gather)
                   and table_bytes <= min(4 << 20, vmem_limit // 4)
                   and vocab <= 4096)

    # Big tile_m (amortize ~0.35us/step + DMA issue), capped by the VMEM budget:
    # 2x double-buffered output tile (+ resident table + one-hot temp on the
    # small path), rounded to the dtype's packed-sublane multiple.
    if tile_m is None:
        tile_m = 256
    budget = int(vmem_limit * 0.6)
    resident = table_bytes if small_table else 0
    per_row = 2 * d_model * itemsize
    if small_table:
        per_row += 2 * 4 + vocab * max(itemsize, 4)   # ids block + one-hot temp
    max_rows = max(sublane, (budget - resident) // per_row)
    tile_m = int(min(tile_m, max_rows, _round_up(m, sublane)))
    tile_m = max(sublane, (tile_m // sublane) * sublane)

    compiler_params = pltpu.CompilerParams(
        dimension_semantics=("parallel",),        # megacore split across TCs (v7x)
        vmem_limit_bytes=vmem_limit)

    def run_chunk(ids_chunk):
        mc = ids_chunk.shape[0]
        mc_pad = _round_up(mc, tile_m)
        if mc_pad != mc:
            ids_chunk = jnp.pad(ids_chunk, (0, mc_pad - mc))  # pad token 0; sliced off
        grid = (mc_pad // tile_m,)

        if small_table:
            cost = pl.CostEstimate(
                flops=2 * mc_pad * vocab * d_model,
                transcendentals=0,
                bytes_accessed=table_bytes + mc_pad * 4 + mc_pad * d_model * itemsize)
            out2d = pl.pallas_call(
                _embed_onehot_kernel,
                out_shape=jax.ShapeDtypeStruct((mc_pad, d_model), table.dtype),
                grid=grid,
                in_specs=[
                    pl.BlockSpec((tile_m, 1), lambda i: (i, 0)),        # ids tile (VMEM)
                    pl.BlockSpec((vocab, d_model), lambda i: (0, 0)),   # resident table
                ],
                out_specs=pl.BlockSpec((tile_m, d_model), lambda i: (i, 0)),
                compiler_params=compiler_params,
                cost_estimate=cost,
            )(ids_chunk.reshape(mc_pad, 1), table)
        else:
            cost = pl.CostEstimate(
                flops=mc_pad * d_model,                                  # scale multiply
                transcendentals=0,
                bytes_accessed=mc_pad * 4 + 2 * mc_pad * d_model * itemsize)
            grid_spec = pltpu.PrefetchScalarGridSpec(
                num_scalar_prefetch=1,                    # ids -> SMEM (bounded per call)
                grid=grid,
                in_specs=[pl.BlockSpec(memory_space=pl.ANY)],   # table stays in HBM
                out_specs=pl.BlockSpec((tile_m, d_model), lambda i, ids: (i, 0)),
                scratch_shapes=[pltpu.SemaphoreType.DMA],       # one shared DMA sem
            )
            out2d = pl.pallas_call(
                _embed_gather_kernel,
                out_shape=jax.ShapeDtypeStruct((mc_pad, d_model), table.dtype),
                grid_spec=grid_spec,
                compiler_params=compiler_params,
                cost_estimate=cost,
            )(ids_chunk, table)
        return out2d[:mc]

    # Bound the scalar-prefetched ids' SMEM footprint by slabbing the token axis.
    max_tokens = max(tile_m, 1 << 15)
    if small_table or m <= max_tokens:
        out_flat = run_chunk(ids_flat)
    else:
        parts = [run_chunk(ids_flat[s:min(s + max_tokens, m)])
                 for s in range(0, m, max_tokens)]
        out_flat = jnp.concatenate(parts, axis=0)

    return out_flat.reshape(*ids.shape, d_model)


if __name__ == "__main__":
    # Small, lane-aligned shapes consistent with the module's forward.
    batch, seq, vocab_size, d_model = 2, 8, 512, 128

    key = jax.random.PRNGKey(0)
    k_ids, k_tbl = jax.random.split(key)
    ids = jax.random.randint(k_ids, (batch, seq), 0, vocab_size, dtype=jnp.int32)
    # nn.Embedding default init: N(0, 1)
    table = jax.random.normal(k_tbl, (vocab_size, d_model), jnp.float32)

    ref = table[ids] * math.sqrt(d_model)

    # Path 1: small-table fast path (VMEM-resident table, one-hot MXU gather).
    out_small = jax.block_until_ready(input_embedding(ids, table))
    assert out_small.shape == (batch, seq, d_model)
    assert jnp.allclose(out_small, ref, atol=1e-4, rtol=1e-4)

    # Path 2: production HBM-gather path (forced), DMA rows straight into o_ref.
    out_gather = jax.block_until_ready(input_embedding(ids, table, force_gather=True))
    assert out_gather.shape == (batch, seq, d_model)
    assert jnp.allclose(out_gather, ref, atol=1e-6, rtol=1e-6)

    print("KERNEL_OK")
</pallas_src>

<mosaic_0001>
module attributes {stable_mosaic.version = 11 : i64} {
  func.func @_embed_onehot_kernel(%arg0: i32, %arg1: memref<16x1xi32, #tpu.memory_space<vmem>>, %arg2: memref<512x128xf32, #tpu.memory_space<vmem>>, %arg3: memref<16x128xf32, #tpu.memory_space<vmem>>) attributes {dimension_semantics = [#tpu.dimension_semantics<parallel>], iteration_bounds = array<i64: 1>, scalar_prefetch = 0 : i64, scratch_operands = 0 : i64, tpu.core_type = #tpu.core_type<tc>, window_params = [{transform_indices = @transform_0, window_bounds = array<i64: 16, 1>}, {pipeline_mode = #tpu.pipeline_mode<synchronous>, transform_indices = @transform_1, window_bounds = array<i64: 512, 128>}, {transform_indices = @transform_2, window_bounds = array<i64: 16, 128>}]} {
    %c0 = arith.constant 0 : index
    %c0_0 = arith.constant 0 : index
    %0 = vector.load %arg1[%c0, %c0_0] : memref<16x1xi32, #tpu.memory_space<vmem>>, vector<16x1xi32>
    %1 = tpu.iota {dimensions = array<i32: 1>} : vector<16x512xi32>
    %2 = vector.broadcast %0 : vector<16x1xi32> to vector<16x512xi32>
    %3 = arith.cmpi eq, %2, %1 : vector<16x512xi32>
    %4 = arith.extui %3 : vector<16x512xi1> to vector<16x512xi32>
    %5 = arith.sitofp %4 : vector<16x512xi32> to vector<16x512xf32>
    %c0_1 = arith.constant 0 : index
    %c0_2 = arith.constant 0 : index
    %6 = vector.load %arg2[%c0_1, %c0_2] : memref<512x128xf32, #tpu.memory_space<vmem>>, vector<512x128xf32>
    %cst = arith.constant dense<0.000000e+00> : vector<16x128xf32>
    %7 = tpu.matmul %5, %6, %cst {dimension_numbers = #tpu.dot_dimension_numbers<[1], [0], [0], [1], [0, 0, 1, 1], [], []>, precision = #tpu.contract_precision<fp32>} : vector<16x512xf32>, vector<512x128xf32>, vector<16x128xf32> -> vector<16x128xf32>
    %cst_3 = arith.constant 11.3137083 : f32
    %8 = vector.broadcast %cst_3 : f32 to vector<16x128xf32>
    %9 = arith.mulf %7, %8 : vector<16x128xf32>
    %c0_4 = arith.constant 0 : index
    %c0_5 = arith.constant 0 : index
    %10 = vector.load %arg3[%c0_4, %c0_5] : memref<16x128xf32, #tpu.memory_space<vmem>>, vector<16x128xf32>
    tpu.vector_store %arg3[%c0_4, %c0_5], %9 {strides = array<i32>} : memref<16x128xf32, #tpu.memory_space<vmem>>, vector<16x128xf32>,
    return
  }
  func.func @transform_0(%arg0: i32) -> (i32, i32) {
    %c0_i32 = arith.constant 0 : i32
    %c0_i32_0 = arith.constant 0 : i32
    return %arg0, %c0_i32 : i32, i32
  }
  func.func @transform_1(%arg0: i32) -> (i32, i32) {
    %c0_i32 = arith.constant 0 : i32
    %c0_i32_0 = arith.constant 0 : i32
    %c0_i32_1 = arith.constant 0 : i32
    return %c0_i32, %c0_i32_0 : i32, i32
  }
  func.func @transform_2(%arg0: i32) -> (i32, i32) {
    %c0_i32 = arith.constant 0 : i32
    %c0_i32_0 = arith.constant 0 : i32
    return %arg0, %c0_i32 : i32, i32
  }
}

</mosaic_0001>

<bundles_post_ra>
// kernel: tpu_custom_call.1
= control target key start
LH: loop header
LB: loop body
LE: loop exit
PB: predicated region body
PF: predicated region fallthrough
CT: control target
= control target key end

     0   :  { %7 = vsyncpa [#allocation3], 0  ;;  %s2935_s0 = inlined_call_operand.vmem [shape: s32[16,1], index: 0, kind: input, shape index: {}]   ;;  %s2936_s1 = inlined_call_operand.hbm [shape: f32[512,128], index: 1, kind: input, shape index: {}]   ;;  %s2937_s2 = inlined_call_operand.hbm [shape: f32[16,128], index: 2, kind: output, shape index: {}]  }
   0x1   :  { %8 = vsyncpa [#allocation4], 0  ;;  %s15_s11 = sshll.u32 %s2936_s1, 4  ;;  %s1732_s12 = smov [#allocation2]   ;;  %s16_s11 = int_to_ptr.hbm [resolvable:$true] %s15_s11 }
   0x2   :  { %s17_s13 = sshll.u32 %s1732_s12, 4  ;;  %s1733_s14 = smov 128   ;;  %s18_s13 = int_to_ptr.vmem [resolvable:$true] %s17_s13 }
   0x3   :  { %s1734_s15 = smov 8  }
   0x4   :  { %23 = dma.hbm_to_vmem [thread:$0]  %s16_s11, 8192, %s18_s13, [#allocation3], %s1733_s14, %s1733_s14, %s1734_s15  }
   0x5   :  { %1728 = dma.done.wait [#allocation3], 8192  }
   0x6   :  { %1729 = vsyncadd [#allocation3], 4294959104  ;;  %v1735_v0 = vmov 0   ;;  %v28_v1 = vld [vmem:[%s2935_s0] sm:$0xff]  ;;  %v80_v2 = vld [vmem:[#allocation2 + $0x78] sm:$0xff]  ;;  %s1627_s22 = sshll.u32 %s2937_s2, 4  ;;  %s1628_s22 = int_to_ptr.hbm [resolvable:$true] %s1627_s22 }
   0x7   :  { %1679 = vset.pattern.permute.xlu0 %v1735_v0  ;;  %v1763_v3 = vand.u32 4294901760, %v80_v2  ;;  %v79_v4 = vld [vmem:[#allocation2 + $0x70] sm:$0xff]  ;;  %v78_v5 = vld [vmem:[#allocation2 + $0x68] sm:$0xff]  ;;  %v77_v6 = vld [vmem:[#allocation2 + $0x60] sm:$0xff] }
   0x8   :  { %36 = vperm.xlu0 %1679, %v28_v1   ;;  %v1765_v7 = vand.u32 4294901760, %v79_v4  ;;  %v1767_v8 = vand.u32 4294901760, %v78_v5  ;;  %v1769_v9 = vand.u32 4294901760, %v77_v6  ;;  %v76_v10 = vld [vmem:[#allocation2 + $0x58] sm:$0xff]  ;;  %v75_v11 = vld [vmem:[#allocation2 + $0x50] sm:$0xff]  ;;  %v74_v12 = vld [vmem:[#allocation2 + $0x48] sm:$0xff] }
   0x9   :  { %v1772_v13 = vsub.f32 %v80_v2, %v1763_v3  ;;  %343 = vmatpush.msra.mxu3 %v1763_v3  ;;  %v1775_v14 = vand.u32 4294901760, %v76_v10  ;;  %130 = vmatpush.msra.mxu0 %v1763_v3  ;;  %v1778_v15 = vand.u32 4294901760, %v75_v11  ;;  %v1780_v16 = vand.u32 4294901760, %v74_v12  ;;  %v73_v17 = vld [vmem:[#allocation2 + $0x40] sm:$0xff]  ;;  %v29_v25 = vld [vmem:[%s2935_s0 + $0x8] sm:$0xff]  ;;  %v72_v35 = vld [vmem:[#allocation2 + $0x38] sm:$0xff] }
   0xa   :  { %v1783_v18 = vsub.f32 %v79_v4, %v1765_v7  ;;  %v1786_v19 = vsub.f32 %v78_v5, %v1767_v8  ;;  %v1789_v20 = vsub.f32 %v77_v6, %v1769_v9  ;;  %v1791_v21 = vand.u32 4294901760, %v73_v17  ;;  %v71_v39 = vld [vmem:[#allocation2 + $0x30] sm:$0xff]  ;;  %v70_v40 = vld [vmem:[#allocation2 + $0x28] sm:$0xff]  ;;  %v69_v42 = vld [vmem:[#allocation2 + $0x20] sm:$0xff]  ;;  %s1738_s0 = smov [#allocation5]  }
   0xb   :  { %v2952_v22 = vand.u32 4294901760, %v1772_v13  ;;  %285 = vmatpush.msra.mxu2 %v1772_v13  ;;  %345 = vmatpush.msra.mxu3 %v1765_v7  ;;  %v1797_v23 = vsub.f32 %v76_v10, %v1775_v14  ;;  %v1800_v24 = vsub.f32 %v75_v11, %v1778_v15  ;;  %v1816_v31 = vsub.f32 %v74_v12, %v1780_v16  ;;  %v68_v47 = vld [vmem:[#allocation2 + $0x18] sm:$0xff]  ;;  %v67_v57 = vld [vmem:[#allocation2 + $0x10] sm:$0xff]  ;;  %v66_v62 = vld [vmem:[#allocation2 + $0x8] sm:$0xff]  ;;  %s1625_s19 = sshll.u32 %s1738_s0, 4  ;;  %s1626_s19 = int_to_ptr.vmem [resolvable:$true] %s1625_s19 }
   0xc   :  { %v2951_v26 = vand.u32 4294901760, %v1783_v18  ;;  %v2950_v27 = vand.u32 4294901760, %v1786_v19  ;;  %v2947_v28 = vand.u32 4294901760, %v1789_v20  ;;  %132 = vmatpush.msra.mxu0 %v1765_v7  ;;  %v1826_v34 = vsub.f32 %v73_v17, %v1791_v21  ;;  %v65_v5 = vld [vmem:[#allocation2] sm:$0xff]  ;;  %v96_v11 = vld [vmem:[#allocation2 + $0xf8] sm:$0xff] }
   0xd   :  { %v181_v29 = vsub.f32 %v1772_v13, %v2952_v22  ;;  %288 = vmatpush.msra.mxu2 %v1783_v18  ;;  %v2946_v30 = vand.u32 4294901760, %v1797_v23  ;;  %347 = vmatpush.msra.mxu3 %v1767_v8  ;;  %v2945_v38 = vand.u32 4294901760, %v1800_v24  ;;  %v2943_v45 = vand.u32 4294901760, %v1816_v31 }
   0xe   :  { %v187_v32 = vsub.f32 %v1783_v18, %v2951_v26  ;;  %v193_v33 = vsub.f32 %v1786_v19, %v2950_v27  ;;  %134 = vmatpush.msra.mxu0 %v1767_v8  ;;  %v199_v37 = vsub.f32 %v1789_v20, %v2947_v28  ;;  %v1840_v46 = vand.u32 4294901760, %v72_v35 }
   0xf   :  { %v182_v36 = vand.u32 4294901760, %v181_v29  ;;  %291 = vmatpush.msra.mxu2 %v1786_v19  ;;  %349 = vmatpush.msra.mxu3 %v1769_v9  ;;  %v205_v44 = vsub.f32 %v1797_v23, %v2946_v30  ;;  %v2942_v48 = vand.u32 4294901760, %v1826_v34  ;;  %v1845_v49 = vand.u32 4294901760, %v71_v39  ;;  %v95_v29 = vld [vmem:[#allocation2 + $0xf0] sm:$0xff] }
  0x10   :  { %39 = vperm.xlu0 %1679, %v29_v25   ;;  %v188_v41 = vand.u32 4294901760, %v187_v32  ;;  %136 = vmatpush.msra.mxu0 %v1769_v9  ;;  %v194_v43 = vand.u32 4294901760, %v193_v33  ;;  %v1847_v50 = vand.u32 4294901760, %v70_v40  ;;  %v200_v51 = vand.u32 4294901760, %v199_v37  ;;  %v94_v32 = vld [vmem:[#allocation2 + $0xe8] sm:$0xff] }
  0x11   :  { %183 = vmatpush.msra.mxu1 %v182_v36  ;;  %294 = vmatpush.msra.mxu2 %v1789_v20  ;;  %v211_v52 = vsub.f32 %v1800_v24, %v2945_v38  ;;  %v1854_v53 = vsub.f32 %v72_v35, %v1840_v46  ;;  %v1856_v54 = vand.u32 4294901760, %v69_v42  ;;  %v1860_v55 = vsub.f32 %v71_v39, %v1845_v49  ;;  %v93_v36 = vld [vmem:[#allocation2 + $0xe0] sm:$0xff] }
  0x12   :  { %351 = vmatpush.msra.mxu3 %v1775_v14  ;;  %138 = vmatpush.msra.mxu0 %v1775_v14  ;;  %v1863_v56 = vand.u32 4294901760, %v68_v47  ;;  %v206_v58 = vand.u32 4294901760, %v205_v44  ;;  %v217_v59 = vsub.f32 %v1816_v31, %v2943_v45  ;;  %v1871_v61 = vsub.f32 %v70_v40, %v1847_v50 }
  0x13   :  { %189 = vmatpush.msra.mxu1 %v188_v41  ;;  %297 = vmatpush.msra.mxu2 %v1797_v23  ;;  %v2941_v60 = vand.u32 4294901760, %v1854_v53  ;;  %v223_v63 = vsub.f32 %v1826_v34, %v2942_v48  ;;  %v212_v0 = vand.u32 4294901760, %v211_v52  ;;  %v2939_v1 = vand.u32 4294901760, %v1860_v55 }
  0x14   :  { %353 = vmatpush.msra.mxu3 %v1778_v15  ;;  %140 = vmatpush.msra.mxu0 %v1778_v15  ;;  %v1881_v2 = vsub.f32 %v69_v42, %v1856_v54  ;;  %v1883_v4 = vand.u32 4294901760, %v67_v57  ;;  %v1888_v6 = vsub.f32 %v68_v47, %v1863_v56  ;;  %v1890_v10 = vand.u32 4294901760, %v66_v62  ;;  %v92_v42 = vld [vmem:[#allocation2 + $0xd8] sm:$0xff] }
  0x15   :  { %195 = vmatpush.msra.mxu1 %v194_v43  ;;  %300 = vmatpush.msra.mxu2 %v1800_v24  ;;  %v218_v12 = vand.u32 4294901760, %v217_v59  ;;  %v229_v17 = vsub.f32 %v1854_v53, %v2941_v60  ;;  %v2938_v25 = vand.u32 4294901760, %v1871_v61  ;;  %v224_v33 = vand.u32 4294901760, %v223_v63  ;;  %v91_v63 = vld [vmem:[#allocation2 + $0xd0] sm:$0xff] }
  0x16   :  { %355 = vmatpush.msra.mxu3 %v1780_v16  ;;  %142 = vmatpush.msra.mxu0 %v1780_v16  ;;  %v1899_v35 = vand.u32 4294901760, %v65_v5  ;;  %v235_v37 = vsub.f32 %v1860_v55, %v2939_v1  ;;  %v2940_v39 = vand.u32 4294901760, %v1881_v2  ;;  %v1907_v40 = vsub.f32 %v67_v57, %v1883_v4 }
  0x17   :  { %201 = vmatpush.msra.mxu1 %v200_v51  ;;  %303 = vmatpush.msra.mxu2 %v1816_v31  ;;  %v1909_v41 = vand.u32 4294901760, %v96_v11  ;;  %v2944_v43 = vand.u32 4294901760, %v1888_v6  ;;  %v1915_v44 = vsub.f32 %v66_v62, %v1890_v10  ;;  %v1917_v47 = vand.u32 4294901760, %v95_v29 }
  0x18   :  { %357 = vmatpush.msra.mxu3 %v1791_v21  ;;  %144 = vmatpush.msra.mxu0 %v1791_v21  ;;  %3001 = vst [vmem:[#allocation8_spill] sm:$0xff] %v1899_v35  ;;  %v1919_v51 = vand.u32 4294901760, %v94_v32  ;;  %v230_v52 = vand.u32 4294901760, %v229_v17  ;;  %v241_v57 = vsub.f32 %v1871_v61, %v2938_v25  ;;  %v1928_v59 = vand.u32 4294901760, %v93_v36 }
  0x19   :  { %207 = vmatpush.msra.mxu1 %v206_v58  ;;  %306 = vmatpush.msra.mxu2 %v1826_v34  ;;  %v1926_v58 = vsub.f32 %v96_v11, %v1909_v41  ;;  %v1933_v62 = vsub.f32 %v65_v5, %v1899_v35  ;;  %v1941_v17 = vand.u32 4294901760, %v92_v42  ;;  %v236_v11 = vand.u32 4294901760, %v235_v37 }
  0x1a   :  { %359 = vmatpush.msra.mxu3 %v1840_v46  ;;  %146 = vmatpush.msra.mxu0 %v1840_v46  ;;  %v247_v25 = vsub.f32 %v1881_v2, %v2940_v39  ;;  %v2949_v1 = vand.u32 4294901760, %v1907_v40  ;;  %v242_v37 = vand.u32 4294901760, %v241_v57  ;;  %v253_v39 = vsub.f32 %v1888_v6, %v2944_v43  ;;  %v89_v43 = vld [vmem:[#allocation2 + $0xc0] sm:$0xff] }
  0x1b   :  { %213 = vmatpush.msra.mxu1 %v212_v0  ;;  %309 = vmatpush.msra.mxu2 %v1854_v53  ;;  %3002 = vst [vmem:[#allocation9_spill] sm:$0xff] %v1926_v58  ;;  %v1936_v0 = vsub.f32 %v95_v29, %v1917_v47  ;;  %v2948_v5 = vand.u32 4294901760, %v1926_v58  ;;  %v2954_v60 = vand.u32 4294901760, %v1915_v44  ;;  %v1960_v48 = vsub.f32 %v93_v36, %v1928_v59 }
  0x1c   :  { %361 = vmatpush.msra.mxu3 %v1845_v49  ;;  %148 = vmatpush.msra.mxu0 %v1845_v49  ;;  %v1969_v45 = vsub.f32 %v92_v42, %v1941_v17  ;;  %v248_v38 = vand.u32 4294901760, %v247_v25  ;;  %v259_v36 = vsub.f32 %v1907_v40, %v2949_v1  ;;  %v2958_v30 = vand.u32 4294901760, %v1933_v62 }
  0x1d   :  { %219 = vmatpush.msra.mxu1 %v218_v12  ;;  %312 = vmatpush.msra.mxu2 %v1860_v55  ;;  %3003 = vst [vmem:[#allocation10_spill] sm:$0xff] %v1936_v0  ;;  %v1939_v12 = vsub.f32 %v94_v32, %v1919_v51  ;;  %v2953_v29 = vand.u32 4294901760, %v1936_v0  ;;  %v1952_v32 = vand.u32 4294901760, %v91_v63  ;;  %v265_v1 = vsub.f32 %v1915_v44, %v2954_v60 }
  0x1e   :  { %363 = vmatpush.msra.mxu3 %v1847_v50  ;;  %150 = vmatpush.msra.mxu0 %v1847_v50  ;;  %3005 = vst [vmem:[#allocation12_spill] sm:$0xff] %v1960_v48  ;;  %v1991_v26 = vand.u32 4294901760, %v89_v43  ;;  %v271_v60 = vsub.f32 %v1933_v62, %v2958_v30  ;;  %v3006_v30 = vand.u32 4294901760, %v1960_v48 }
  0x1f   :  { %3004 = vst [vmem:[#allocation11_spill] sm:$0xff] %v1939_v12  ;;  %225 = vmatpush.msra.mxu1 %v224_v33  ;;  %315 = vmatpush.msra.mxu2 %v1871_v61  ;;  %v90_v33 = vld [vmem:[#allocation2 + $0xc8] sm:$0xff]  ;;  %v2957_v57 = vand.u32 4294901760, %v1939_v12  ;;  %v559_v42 = vsub.f32 %v1936_v0, %v2953_v29  ;;  %v1984_v25 = vsub.f32 %v91_v63, %v1952_v32  ;;  %v260_v29 = vand.u32 4294901760, %v259_v36 }
  0x20   :  { %365 = vmatpush.msra.mxu3 %v1856_v54  ;;  %152 = vmatpush.msra.mxu0 %v1856_v54  ;;  %v1976_v28 = vand.u32 4294901760, %v90_v33  ;;  %v266_v36 = vand.u32 4294901760, %v265_v1  ;;  %v85_v1 = vld [vmem:[#allocation2 + $0xa0] sm:$0xff] }
  0x21   :  { %231 = vmatpush.msra.mxu1 %v230_v52  ;;  %318 = vmatpush.msra.mxu2 %v1881_v2  ;;  %v553_v52 = vsub.f32 %v1926_v58, %v2948_v5  ;;  %v254_v5 = vand.u32 4294901760, %v253_v39  ;;  %v565_v63 = vsub.f32 %v1939_v12, %v2957_v57  ;;  %v560_v0 = vand.u32 4294901760, %v559_v42 }
  0x22   :  { %367 = vmatpush.msra.mxu3 %v1863_v56  ;;  %154 = vmatpush.msra.mxu0 %v1863_v56  ;;  %v2004_v27 = vsub.f32 %v90_v33, %v1976_v28  ;;  %v571_v39 = vsub.f32 %v1960_v48, %v3006_v30  ;;  %v2016_v33 = vsub.f32 %v89_v43, %v1991_v26  ;;  %v3007_v57 = vand.u32 4294901760, %v1969_v45 }
  0x23   :  { %237 = vmatpush.msra.mxu1 %v236_v11  ;;  %321 = vmatpush.msra.mxu2 %v1888_v6  ;;  %v88_v11 = vld [vmem:[#allocation2 + $0xb8] sm:$0xff]  ;;  %v554_v22 = vand.u32 4294901760, %v553_v52  ;;  %v566_v42 = vand.u32 4294901760, %v565_v63  ;;  %v272_v58 = vand.u32 4294901760, %v271_v60  ;;  %v3010_v60 = vand.u32 4294901760, %v1783_v18 }
  0x24   :  { %369 = vmatpush.msra.mxu3 %v1883_v4  ;;  %156 = vmatpush.msra.mxu0 %v1883_v4  ;;  %v2006_v52 = vand.u32 4294901760, %v88_v11  ;;  %v588_v30 = vand.u32 4294901760, %v2004_v27  ;;  %v84_v63 = vld [vmem:[#allocation2 + $0x98] sm:$0xff] }
  0x25   :  { %243 = vmatpush.msra.mxu1 %v242_v37  ;;  %324 = vmatpush.msra.mxu2 %v1907_v40  ;;  %v87_v37 = vld [vmem:[#allocation2 + $0xb0] sm:$0xff] }
  0x26   :  { %371 = vmatpush.msra.mxu3 %v1890_v10  ;;  %158 = vmatpush.msra.mxu0 %v1890_v10  ;;  %v2018_v12 = vand.u32 4294901760, %v87_v37  ;;  %v2028_v43 = vsub.f32 %v88_v11, %v2006_v52  ;;  %v2042_v11 = vand.u32 4294901760, %v85_v1  ;;  %v589_v18 = vsub.f32 %v2004_v27, %v588_v30 }
  0x27   :  { %249 = vmatpush.msra.mxu1 %v248_v38  ;;  %327 = vmatpush.msra.mxu2 %v1915_v44  ;;  %v86_v38 = vld [vmem:[#allocation2 + $0xa8] sm:$0xff] }
  0x28   :  { %373 = vmatpush.msra.mxu3 %v1899_v35  ;;  %160 = vmatpush.msra.mxu0 %v1899_v35  ;;  %v3008_v35 = vand.u32 4294901760, %v1772_v13  ;;  %v2030_v48 = vand.u32 4294901760, %v86_v38  ;;  %v572_v13 = vand.u32 4294901760, %v571_v39  ;;  %v600_v39 = vand.u32 4294901760, %v2028_v43 }
  0x29   :  { %255 = vmatpush.msra.mxu1 %v254_v5  ;;  %330 = vmatpush.msra.mxu2 %v1933_v62  ;;  %v577_v5 = vsub.f32 %v1969_v45, %v3007_v57 }
  0x2a   :  { %555 = vmatpush.msrb.mxu3 %v554_v22  ;;  %390 = vmatpush.msrb.mxu0 %v3008_v35  ;;  %v3009_v22 = vand.u32 4294901760, %v1984_v25  ;;  %v594_v35 = vand.u32 4294901760, %v2016_v33 }
  0x2b   :  { %502 = vmatpush.msrb.mxu2 %v1909_v41  ;;  %261 = vmatpush.msra.mxu1 %v260_v29  ;;  %v2040_v29 = vsub.f32 %v87_v37, %v2018_v12  ;;  %v2054_v37 = vand.u32 4294901760, %v84_v63 }
  0x2c   :  { %561 = vmatpush.msrb.mxu3 %v560_v0  ;;  %v583_v57 = vsub.f32 %v1984_v25, %v3009_v22  ;;  %394 = vmatpush.msrb.mxu0 %v3010_v60  ;;  %v578_v0 = vand.u32 4294901760, %v577_v5  ;;  %v3011_v22 = vand.u32 4294901760, %v1786_v19 }
  0x2d   :  { %504 = vmatpush.msrb.mxu2 %v1917_v47  ;;  %267 = vmatpush.msra.mxu1 %v266_v36  ;;  %v2052_v36 = vsub.f32 %v86_v38, %v2030_v48  ;;  %v606_v5 = vand.u32 4294901760, %v2040_v29  ;;  %v2065_v38 = vsub.f32 %v85_v1, %v2042_v11 }
  0x2e   :  { %567 = vmatpush.msrb.mxu3 %v566_v42  ;;  %398 = vmatpush.msrb.mxu0 %v3011_v22  ;;  %v584_v19 = vand.u32 4294901760, %v583_v57  ;;  %v595_v42 = vsub.f32 %v2016_v33, %v594_v35  ;;  %v601_v57 = vsub.f32 %v2028_v43, %v600_v39 }
  0x2f   :  { %506 = vmatpush.msrb.mxu2 %v1919_v51  ;;  %273 = vmatpush.msra.mxu1 %v272_v58  ;;  %v3012_v58 = vand.u32 4294901760, %v1789_v20  ;;  %v590_v20 = vand.u32 4294901760, %v589_v18  ;;  %v612_v60 = vand.u32 4294901760, %v2052_v36  ;;  %v607_v1 = vsub.f32 %v2040_v29, %v606_v5 }
  0x30   :  { %573 = vmatpush.msrb.mxu3 %v572_v13  ;;  %v2076_v13 = vsub.f32 %v84_v63, %v2054_v37  ;;  %v602_v63 = vand.u32 4294901760, %v601_v57 }
  0x31   :  { %461 = vmatpush.msrb.mxu1 %v1763_v3  ;;  %508 = vmatpush.msrb.mxu2 %v1928_v59  ;;  %v3013_v3 = vand.u32 4294901760, %v1797_v23  ;;  %v596_v23 = vand.u32 4294901760, %v595_v42  ;;  %v608_v18 = vand.u32 4294901760, %v607_v1  ;;  %v83_v42 = vld [vmem:[#allocation2 + $0x90] sm:$0xff] }
  0x32   :  { %402 = vmatpush.msrb.mxu0 %v3012_v58  ;;  %579 = vmatpush.msrb.mxu3 %v578_v0  ;;  %v618_v0 = vand.u32 4294901760, %v2065_v38  ;;  %v624_v22 = vand.u32 4294901760, %v2076_v13  ;;  %v3017_v58 = vand.u32 4294901760, %v1854_v53  ;;  %v3019_v53 = vand.u32 4294901760, %v1871_v61 }
  0x33   :  { %463 = vmatpush.msrb.mxu1 %v1765_v7  ;;  %510 = vmatpush.msrb.mxu2 %v1941_v17  ;;  %v3014_v7 = vand.u32 4294901760, %v1800_v24  ;;  %v613_v24 = vsub.f32 %v2052_v36, %v612_v60  ;;  %v3023_v61 = vand.u32 4294901760, %v1915_v44 }
  0x34   :  { %406 = vmatpush.msrb.mxu0 %v3013_v3  ;;  %585 = vmatpush.msrb.mxu3 %v584_v19  ;;  %v625_v19 = vsub.f32 %v2076_v13, %v624_v22 }
  0x35   :  { %465 = vmatpush.msrb.mxu1 %v1767_v8  ;;  %512 = vmatpush.msrb.mxu2 %v1952_v32  ;;  %v3015_v8 = vand.u32 4294901760, %v1816_v31  ;;  %v619_v31 = vsub.f32 %v2065_v38, %v618_v0 }
  0x36   :  { %410 = vmatpush.msrb.mxu0 %v3014_v7  ;;  %591 = vmatpush.msrb.mxu3 %v590_v20  ;;  %v626_v3 = vand.u32 4294901760, %v625_v19  ;;  %v2984_v19 = vmov 1.0  }
  0x37   :  { %467 = vmatpush.msrb.mxu1 %v1769_v9  ;;  %514 = vmatpush.msrb.mxu2 %v1976_v28  ;;  %v3016_v9 = vand.u32 4294901760, %v1826_v34  ;;  %v3018_v34 = vand.u32 4294901760, %v1860_v55  ;;  %v3021_v55 = vand.u32 4294901760, %v1888_v6 }
  0x38   :  { %414 = vmatpush.msrb.mxu0 %v3015_v8  ;;  %597 = vmatpush.msrb.mxu3 %v596_v23 }
  0x39   :  { %469 = vmatpush.msrb.mxu1 %v1775_v14  ;;  %516 = vmatpush.msrb.mxu2 %v1991_v26  ;;  %v614_v14 = vand.u32 4294901760, %v613_v24  ;;  %v30_v24 = vlaneseq }
  0x3a   :  { %418 = vmatpush.msrb.mxu0 %v3016_v9  ;;  %603 = vmatpush.msrb.mxu3 %v602_v63 }
  0x3b   :  { %471 = vmatpush.msrb.mxu1 %v1778_v15  ;;  %518 = vmatpush.msrb.mxu2 %v2006_v52  ;;  %v620_v15 = vand.u32 4294901760, %v619_v31  ;;  %v2166_v9 = vand.u32 127, %v30_v24 }
  0x3c   :  { %422 = vmatpush.msrb.mxu0 %v3017_v58  ;;  %609 = vmatpush.msrb.mxu3 %v608_v18 }
  0x3d   :  { %473 = vmatpush.msrb.mxu1 %v1780_v16  ;;  %520 = vmatpush.msrb.mxu2 %v2018_v12  ;;  %v3020_v16 = vand.u32 4294901760, %v1881_v2  ;;  %v82_v2 = vld [vmem:[#allocation2 + $0x88] sm:$0xff]  ;;  %v2169_v18 = vadd.s32 384, %v2166_v9  ;;  %v2174_v58 = vadd.s32 128, %v2166_v9 }
  0x3e   :  { %426 = vmatpush.msrb.mxu0 %v3018_v34  ;;  %615 = vmatpush.msrb.mxu3 %v614_v14  ;;  %v2139_v6 = vand.u32 4294901760, %v82_v2  ;;  %v2177_v14 = vadd.s32 256, %v2166_v9  ;;  %v1737_v34 = vmov 0.0  }
  0x3f   :  { %475 = vmatpush.msrb.mxu1 %v1791_v21  ;;  %522 = vmatpush.msrb.mxu2 %v2030_v48  ;;  %v2122_v21 = vand.u32 4294901760, %v83_v42 }
  0x40   :  { %430 = vmatpush.msrb.mxu0 %v3019_v53  ;;  %621 = vmatpush.msrb.mxu3 %v620_v15 }
  0x41   :  { %477 = vmatpush.msrb.mxu1 %v1840_v46  ;;  %524 = vmatpush.msrb.mxu2 %v2042_v11  ;;  %v3022_v46 = vand.u32 4294901760, %v1907_v40  ;;  %v2142_v40 = vsub.f32 %v83_v42, %v2122_v21 }
  0x42   :  { %434 = vmatpush.msrb.mxu0 %v3020_v16  ;;  %627 = vmatpush.msrb.mxu3 %v626_v3 }
  0x43   :  { %479 = vmatpush.msrb.mxu1 %v1845_v49  ;;  %526 = vmatpush.msrb.mxu2 %v2054_v37  ;;  %v3024_v49 = vand.u32 4294901760, %v1933_v62  ;;  %v2149_v62 = vsub.f32 %v82_v2, %v2139_v6 }
  0x44   :  { %438 = vmatpush.msrb.mxu0 %v3021_v55  ;;  %v3026_v55 = vld [vmem:[#allocation9_spill] sm:$0xff] }
  0x45   :  { %481 = vmatpush.msrb.mxu1 %v1847_v50  ;;  %528 = vmatpush.msrb.mxu2 %v2122_v21  ;;  %v3025_v50 = vld [vmem:[#allocation8_spill] sm:$0xff] }
  0x46   :  { %442 = vmatpush.msrb.mxu0 %v3022_v46  ;;  %v3027_v46 = vand.u32 4294901760, %v3026_v55 }
  0x47   :  { %483 = vmatpush.msrb.mxu1 %v1856_v54  ;;  %530 = vmatpush.msrb.mxu2 %v2139_v6  ;;  %v630_v54 = vand.u32 4294901760, %v2142_v40 }
  0x48   :  { %446 = vmatpush.msrb.mxu0 %v3023_v61 }
  0x49   :  { %485 = vmatpush.msrb.mxu1 %v1863_v56  ;;  %v81_v56 = vld [vmem:[#allocation2 + $0x80] sm:$0xff] }
  0x4a   :  { %450 = vmatpush.msrb.mxu0 %v3024_v49  ;;  %v2146_v44 = vand.u32 4294901760, %v81_v56 }
  0x4b   :  { %487 = vmatpush.msrb.mxu1 %v1883_v4  ;;  %v631_v4 = vsub.f32 %v2142_v40, %v630_v54 }
  0x4c   :  { %532 = vmatpush.msrb.mxu2 %v2146_v44  ;;  %v2157_v20 = vsub.f32 %v81_v56, %v2146_v44 }
  0x4d   :  { %489 = vmatpush.msrb.mxu1 %v1890_v10  ;;  %v636_v10 = vand.u32 4294901760, %v2149_v62  ;;  %v632_v57 = vand.u32 4294901760, %v631_v4 }
  0x4e   :  { %v642_v23 = vand.u32 4294901760, %v2157_v20 }
  0x4f   :  { %491 = vmatpush.msrb.mxu1 %v3025_v50  ;;  %v637_v7 = vsub.f32 %v2149_v62, %v636_v10  ;;  %633 = vmatpush.msrb.mxu3 %v632_v57  ;;  %v3028_v50 = vld [vmem:[#allocation10_spill] sm:$0xff]  ;;  %v3031_v57 = vld [vmem:[#allocation11_spill] sm:$0xff] }
  0x50   :  { %v643_v8 = vsub.f32 %v2157_v20, %v642_v23  ;;  %v3029_v2 = vand.u32 4294901760, %v3028_v50 }
  0x51   :  { %v638_v1 = vand.u32 4294901760, %v637_v7  ;;  %v3032_v7 = vand.u32 4294901760, %v3031_v57 }
  0x52   :  { %v644_v63 = vand.u32 4294901760, %v643_v8 }
  0x53   :  { %639 = vmatpush.msrb.mxu3 %v638_v1 }
  0x55   :  { %645 = vmatpush.msrb.mxu3 %v644_v63 }
  0x7a   :  { %v2171_v31 = vpop.permute.xlu0 %36 }
  0x7b   :  { %vm41_vm0 = vcmp.eq.s32.totalorder %v2171_v31, %v2166_v9  ;;  %vm44_vm1 = vcmp.eq.s32.totalorder %v2171_v31, %v2169_v18  ;;  %vm42_vm2 = vcmp.eq.s32.totalorder %v2171_v31, %v2174_v58  ;;  %vm43_vm3 = vcmp.eq.s32.totalorder %v2171_v31, %v2177_v14 }
  0x7c   :  { %1648 = vmatmul.msk.f32.vlgmr.msra.gmra.mxu1 %vm41_vm0, %v2984_v19  ;;  %v1640_v15 = vsel %vm41_vm0, 1.0, %v1737_v34  ;;  %v2193_v53 = vsel %vm44_vm1, 1.0, %v1737_v34  ;;  %v2204_v16 = vsel %vm43_vm3, 1.0, %v1737_v34  ;;  %v1641_v49 = vsel %vm42_vm2, 1.0, %v1737_v34 }
  0x7d   :  { %715 = vmatpush.msra.mxu1 %v1909_v41  ;;  %v162_v42 = vsub.f32 %v1640_v15, %v1640_v15  ;;  %v2228_v1 = vsub.f32 %v1641_v49, %v1641_v49 }
  0x7f   :  { %717 = vmatpush.msra.mxu1 %v1917_v47  ;;  %333 = vmatmul.f32.vlgmr.msra.gmra.mxu2 %v162_v42  ;;  %v163_v3 = vand.u32 4294901760, %v162_v42  ;;  %v535_v15 = vand.u32 4294901760, %v2228_v1 }
  0x80   :  { %762 = vmatpush.msra.mxu2 %v3027_v46 }
  0x81   :  { %719 = vmatpush.msra.mxu1 %v1919_v51  ;;  %377 = vmatmul.f32.vlgmr.msra.gmra.mxu3 %v163_v3  ;;  %v164_v61 = vsub.f32 %v162_v42, %v163_v3  ;;  %v3035_v42 = vand.u32 4294901760, %v1969_v45  ;;  %v536_v49 = vsub.f32 %v2228_v1, %v535_v15 }
  0x82   :  { %766 = vmatpush.msra.mxu2 %v3029_v2  ;;  %833 = vmatpush.msra.mxu3 %v1909_v41  ;;  %v2215_v56 = vpop.permute.xlu0 %39 }
  0x83   :  { %3030 = vst [vmem:[#allocation8_spill] sm:$0xff] %v2215_v56  ;;  %721 = vmatpush.msra.mxu1 %v1928_v59  ;;  %vm48_vm4 = vcmp.eq.s32.totalorder %v2215_v56, %v2169_v18  ;;  %vm45_vm5 = vcmp.eq.s32.totalorder %v2215_v56, %v2166_v9  ;;  %v165_v4 = vand.u32 4294901760, %v164_v61  ;;  %vm47_vm6 = vcmp.eq.s32.totalorder %v2215_v56, %v2177_v14 }
  0x84   :  { %770 = vmatpush.msra.mxu2 %v3032_v7  ;;  %835 = vmatpush.msra.mxu3 %v1917_v47  ;;  %v1644_v41 = vsel %vm45_vm5, 1.0, %v1737_v34  ;;  %v3033_v47 = vld [vmem:[#allocation12_spill] sm:$0xff]  ;;  %vm46_vm7 = vcmp.eq.s32.totalorder %v2215_v56, %v2174_v58  ;;  %v3036_v61 = vand.u32 4294901760, %v1984_v25 }
  0x85   :  { %1649 = vmatmul.msk.f32.gmra.mxu1 %vm45_vm5, %v2984_v19  ;;  %166 = vmatmul.f32.vlgmr.msra.gmra.mxu0 %v165_v4  ;;  %v170_v8 = vsub.f32 %v1644_v41, %v1644_v41  ;;  %v3034_v63 = vand.u32 4294901760, %v3033_v47  ;;  %v1645_v46 = vsel %vm46_vm7, 1.0, %v1737_v34  ;;  %v111_v4 = vld [vmem:[#allocation2 + $0x170] sm:$0xff] }
  0x86   :  { %723 = vmatpush.msra.mxu1 %v1941_v17  ;;  %657 = vmatpush.msra.mxu0 %v3026_v55  ;;  %v2251_v55 = vsel %vm47_vm6, 1.0, %v1737_v34 }
  0x87   :  { %774 = vmatpush.msra.mxu2 %v3034_v63  ;;  %837 = vmatpush.msra.mxu3 %v1919_v51  ;;  %v171_v24 = vand.u32 4294901760, %v170_v8 }
  0x88   :  { %725 = vmatpush.msra.mxu1 %v1952_v32  ;;  %338 = vmatmul.f32.gmra.mxu2 %v170_v8 }
  0x89   :  { %660 = vmatpush.msra.mxu0 %v3028_v50  ;;  %778 = vmatpush.msra.mxu2 %v3035_v42  ;;  %v172_v3 = vsub.f32 %v170_v8, %v171_v24  ;;  %v2270_v50 = vsel %vm48_vm4, 1.0, %v1737_v34  ;;  %v537_v34 = vand.u32 4294901760, %v536_v49 }
  0x8a   :  { %839 = vmatpush.msra.mxu3 %v1928_v59  ;;  %727 = vmatpush.msra.mxu1 %v1976_v28  ;;  %v112_v59 = vld [vmem:[#allocation2 + $0x178] sm:$0xff] }
  0x8b   :  { %383 = vmatmul.f32.gmra.mxu3 %v171_v24  ;;  %663 = vmatpush.msra.mxu0 %v3031_v57  ;;  %v173_v51 = vand.u32 4294901760, %v172_v3  ;;  %v2281_v2 = vand.u32 4294901760, %v112_v59  ;;  %v2290_v57 = vand.u32 4294901760, %v111_v4 }
  0x8c   :  { %782 = vmatpush.msra.mxu2 %v3036_v61  ;;  %841 = vmatpush.msra.mxu3 %v1941_v17  ;;  %v2275_v17 = vsub.f32 %v1645_v46, %v1645_v46  ;;  %v104_v46 = vld [vmem:[#allocation2 + $0x138] sm:$0xff]  ;;  %v103_v61 = vld [vmem:[#allocation2 + $0x130] sm:$0xff] }
  0x8d   :  { %729 = vmatpush.msra.mxu1 %v1991_v26  ;;  %666 = vmatpush.msra.mxu0 %v3033_v47  ;;  %v106_v47 = vld [vmem:[#allocation2 + $0x148] sm:$0xff]  ;;  %v2399_v49 = vand.u32 4294901760, %v104_v46 }
  0x8e   :  { %786 = vmatpush.msra.mxu2 %v588_v30  ;;  %843 = vmatpush.msra.mxu3 %v1952_v32  ;;  %v110_v32 = vld [vmem:[#allocation2 + $0x168] sm:$0xff]  ;;  %v543_v30 = vand.u32 4294901760, %v2275_v17  ;;  %v2364_v42 = vand.u32 4294901760, %v106_v47 }
  0x8f   :  { %1652 = vmatmul.msk.f32.vlgmr.msrb.gmra.mxu1 %vm41_vm0, %v2984_v19  ;;  %174 = vmatmul.f32.gmra.mxu0 %v173_v51 }
  0x90   :  { %731 = vmatpush.msra.mxu1 %v2006_v52  ;;  %669 = vmatpush.msra.mxu0 %v1969_v45  ;;  %v2296_v45 = vsub.f32 %v112_v59, %v2281_v2 }
  0x91   :  { %790 = vmatpush.msra.mxu2 %v594_v35  ;;  %845 = vmatpush.msra.mxu3 %v1976_v28  ;;  %v2300_v28 = vand.u32 4294901760, %v110_v32  ;;  %v109_v35 = vld [vmem:[#allocation2 + $0x160] sm:$0xff] }
  0x92   :  { %733 = vmatpush.msra.mxu1 %v2018_v12  ;;  %538 = vmatmul.f32.vlgmr.msrb.gmra.mxu2 %v537_v34  ;;  %v2982_v7 = vand.u32 4294901760, %v2296_v45  ;;  %v2414_v34 = vand.u32 4294901760, %v103_v61 }
  0x93   :  { %672 = vmatpush.msra.mxu0 %v1984_v25  ;;  %794 = vmatpush.msra.mxu2 %v600_v39  ;;  %v2314_v25 = vsub.f32 %v111_v4, %v2290_v57  ;;  %v108_v39 = vld [vmem:[#allocation2 + $0x158] sm:$0xff]  ;;  %v102_v4 = vld [vmem:[#allocation2 + $0x128] sm:$0xff] }
  0x94   :  { %847 = vmatpush.msra.mxu3 %v1991_v26  ;;  %735 = vmatpush.msra.mxu1 %v2030_v48  ;;  %v544_v26 = vsub.f32 %v2275_v17, %v543_v30  ;;  %v925_v41 = vsub.f32 %v2296_v45, %v2982_v7 }
  0x95   :  { %1654 = vmatmul.msk.f32.vlgmr.msrb.gmra.mxu3 %vm42_vm2, %v2984_v19  ;;  %675 = vmatpush.msra.mxu0 %v2004_v27  ;;  %v2319_v27 = vand.u32 4294901760, %v109_v35 }
  0x96   :  { %798 = vmatpush.msra.mxu2 %v606_v5  ;;  %849 = vmatpush.msra.mxu3 %v2006_v52  ;;  %v2325_v52 = vsub.f32 %v110_v32, %v2300_v28  ;;  %v107_v5 = vld [vmem:[#allocation2 + $0x150] sm:$0xff]  ;;  %v2426_v32 = vand.u32 4294901760, %v102_v4 }
  0x97   :  { %737 = vmatpush.msra.mxu1 %v2042_v11  ;;  %678 = vmatpush.msra.mxu0 %v2016_v33  ;;  %v2335_v33 = vand.u32 4294901760, %v108_v39  ;;  %v2347_v8 = vsub.f32 %v109_v35, %v2319_v27  ;;  %v2351_v63 = vand.u32 4294901760, %v107_v5 }
  0x98   :  { %802 = vmatpush.msra.mxu2 %v612_v60  ;;  %851 = vmatpush.msra.mxu3 %v2018_v12  ;;  %v545_v12 = vand.u32 4294901760, %v544_v26  ;;  %v2981_v60 = vand.u32 4294901760, %v2314_v25  ;;  %v100_v26 = vld [vmem:[#allocation2 + $0x118] sm:$0xff] }
  0x99   :  { %1653 = vmatmul.msk.f32.gmra.mxu1 %vm45_vm5, %v2984_v19  ;;  %1650 = vmatmul.msk.f32.vlgmr.msrb.gmra.mxu0 %vm41_vm0, %v2984_v19  ;;  %v2379_v3 = vsub.f32 %v107_v5, %v2351_v63  ;;  %v2436_v5 = vsub.f32 %v103_v61, %v2414_v34 }
  0x9a   :  { %739 = vmatpush.msra.mxu1 %v2054_v37  ;;  %681 = vmatpush.msra.mxu0 %v2028_v43  ;;  %v2980_v43 = vand.u32 4294901760, %v2325_v52  ;;  %v931_v24 = vsub.f32 %v2314_v25, %v2981_v60 }
  0x9b   :  { %806 = vmatpush.msra.mxu2 %v618_v0  ;;  %853 = vmatpush.msra.mxu3 %v2030_v48  ;;  %v2357_v48 = vsub.f32 %v108_v39, %v2335_v33  ;;  %v105_v0 = vld [vmem:[#allocation2 + $0x140] sm:$0xff] }
  0x9c   :  { %741 = vmatpush.msra.mxu1 %v2122_v21  ;;  %546 = vmatmul.f32.gmra.mxu2 %v545_v12  ;;  %v2381_v51 = vand.u32 4294901760, %v105_v0 }
  0x9d   :  { %684 = vmatpush.msra.mxu0 %v2040_v29  ;;  %810 = vmatpush.msra.mxu2 %v624_v22  ;;  %v926_v29 = vand.u32 4294901760, %v925_v41  ;;  %v2979_v22 = vand.u32 4294901760, %v2347_v8  ;;  %v99_v41 = vld [vmem:[#allocation2 + $0x110] sm:$0xff] }
  0x9e   :  { %855 = vmatpush.msra.mxu3 %v2042_v11  ;;  %743 = vmatpush.msra.mxu1 %v2139_v6  ;;  %v937_v11 = vsub.f32 %v2325_v52, %v2980_v43  ;;  %v2406_v59 = vsub.f32 %v105_v0, %v2381_v51  ;;  %v2451_v0 = vsub.f32 %v102_v4, %v2426_v32  ;;  %v2465_v61 = vand.u32 4294901760, %v99_v41  ;;  %v121_v43 = vld [vmem:[#allocation2 + $0x1c0] sm:$0xff] }
  0x9f   :  { %1655 = vmatmul.msk.f32.gmra.mxu3 %vm46_vm7, %v2984_v19  ;;  %687 = vmatpush.msra.mxu0 %v2052_v36  ;;  %v2977_v36 = vand.u32 4294901760, %v2357_v48 }
  0xa0   :  { %814 = vmatpush.msra.mxu2 %v630_v54  ;;  %857 = vmatpush.msra.mxu3 %v2054_v37  ;;  %v932_v37 = vand.u32 4294901760, %v931_v24  ;;  %v2390_v54 = vsub.f32 %v106_v47, %v2364_v42  ;;  %v2453_v24 = vand.u32 4294901760, %v100_v26  ;;  %v2967_v4 = vand.u32 4294901760, %v2451_v0 }
  0xa1   :  { %745 = vmatpush.msra.mxu1 %v2146_v44  ;;  %690 = vmatpush.msra.mxu0 %v2065_v38  ;;  %v943_v38 = vsub.f32 %v2347_v8, %v2979_v22  ;;  %v949_v9 = vsub.f32 %v2357_v48, %v2977_v36 }
  0xa2   :  { %818 = vmatpush.msra.mxu2 %v636_v10  ;;  %859 = vmatpush.msra.mxu3 %v2122_v21  ;;  %v938_v21 = vand.u32 4294901760, %v937_v11  ;;  %v2976_v10 = vand.u32 4294901760, %v2379_v3  ;;  %v98_v11 = vld [vmem:[#allocation2 + $0x108] sm:$0xff] }
  0xa3   :  { %927 = vmatpush.msrb.mxu1 %v926_v29  ;;  %1651 = vmatmul.msk.f32.gmra.mxu0 %vm45_vm5, %v2984_v19  ;;  %v950_v39 = vand.u32 4294901760, %v949_v9  ;;  %v2477_v9 = vsub.f32 %v100_v26, %v2453_v24 }
  0xa4   :  { %749 = vmatmul.f32.vlgmr.msra.gmra.mxu1 %v535_v15  ;;  %693 = vmatpush.msra.mxu0 %v2076_v13  ;;  %v2975_v13 = vand.u32 4294901760, %v2390_v54  ;;  %v101_v15 = vld [vmem:[#allocation2 + $0x120] sm:$0xff]  ;;  %v955_v35 = vsub.f32 %v2379_v3, %v2976_v10  ;;  %v122_v10 = vld [vmem:[#allocation2 + $0x1c8] sm:$0xff] }
  0xa5   :  { %822 = vmatpush.msra.mxu2 %v642_v23  ;;  %861 = vmatpush.msra.mxu3 %v2139_v6  ;;  %v944_v6 = vand.u32 4294901760, %v943_v38  ;;  %v2424_v23 = vsub.f32 %v104_v46, %v2399_v49  ;;  %v2438_v12 = vand.u32 4294901760, %v101_v15  ;;  %v2969_v46 = vand.u32 4294901760, %v2436_v5  ;;  %v97_v38 = vld [vmem:[#allocation2 + $0x100] sm:$0xff] }
  0xa6   :  { %933 = vmatpush.msrb.mxu1 %v932_v37  ;;  %696 = vmatpush.msra.mxu0 %v2142_v40  ;;  %v2973_v40 = vand.u32 4294901760, %v2406_v59  ;;  %v2491_v26 = vand.u32 4294901760, %v97_v38  ;;  %v2604_v22 = vand.u32 4294901760, %v122_v10 }
  0xa7   :  { %1029 = vmatpush.msrb.mxu2 %v2296_v45  ;;  %863 = vmatpush.msra.mxu3 %v2146_v44  ;;  %v961_v44 = vsub.f32 %v2390_v54, %v2975_v13  ;;  %v2972_v47 = vand.u32 4294901760, %v2424_v23  ;;  %v2463_v37 = vsub.f32 %v101_v15, %v2438_v12  ;;  %v2479_v15 = vand.u32 4294901760, %v98_v11 }
  0xa8   :  { %1656 = vmatmul.msk.f32.vlgmr.msra.gmra.mxu2 %vm42_vm2, %v2984_v19  ;;  %939 = vmatpush.msrb.mxu1 %v938_v21  ;;  %v967_v29 = vsub.f32 %v2406_v59, %v2973_v40  ;;  %v125_v40 = vld [vmem:[#allocation2 + $0x1e0] sm:$0xff]  ;;  %v2626_v60 = vsub.f32 %v122_v10, %v2604_v22 }
  0xa9   :  { %1032 = vmatpush.msrb.mxu2 %v2314_v25  ;;  %1087 = vmatpush.msrb.mxu3 %v2281_v2  ;;  %v973_v21 = vsub.f32 %v2424_v23, %v2972_v47 }
  0xaa   :  { %699 = vmatpush.msra.mxu0 %v2149_v62  ;;  %1658 = vmatmul.msk.f32.vlgmr.msra.gmra.mxu3 %vm42_vm2, %v2984_v19  ;;  %v956_v62 = vand.u32 4294901760, %v955_v35  ;;  %v2489_v35 = vsub.f32 %v99_v41, %v2465_v61  ;;  %v2968_v41 = vand.u32 4294901760, %v2477_v9 }
  0xab   :  { %945 = vmatpush.msrb.mxu1 %v944_v6  ;;  %1035 = vmatpush.msrb.mxu2 %v2325_v52  ;;  %v2966_v6 = vand.u32 4294901760, %v2463_v37 }
  0xac   :  { %1089 = vmatpush.msrb.mxu3 %v2290_v57  ;;  %702 = vmatpush.msra.mxu0 %v2157_v20  ;;  %v962_v20 = vand.u32 4294901760, %v961_v44  ;;  %v985_v44 = vsub.f32 %v2451_v0, %v2967_v4  ;;  %v127_v4 = vld [vmem:[#allocation2 + $0x1f0] sm:$0xff] }
  0xad   :  { %951 = vmatpush.msrb.mxu1 %v950_v39  ;;  %1038 = vmatpush.msrb.mxu2 %v2347_v8  ;;  %v974_v39 = vand.u32 4294901760, %v973_v21  ;;  %v2970_v21 = vand.u32 4294901760, %v2489_v35 }
  0xae   :  { %874 = vmatpush.msrb.mxu0 %v2281_v2  ;;  %755 = vmatmul.f32.gmra.mxu1 %v543_v30  ;;  %v968_v30 = vand.u32 4294901760, %v967_v29  ;;  %v986_v58 = vand.u32 4294901760, %v985_v44 }
  0xaf   :  { %1091 = vmatpush.msrb.mxu3 %v2300_v28  ;;  %705 = vmatmul.f32.vlgmr.msra.gmra.mxu0 %v2228_v1  ;;  %v979_v1 = vsub.f32 %v2436_v5, %v2969_v46 }
  0xb0   :  { %957 = vmatpush.msrb.mxu1 %v956_v62  ;;  %876 = vmatpush.msrb.mxu0 %v2290_v57  ;;  %v2504_v62 = vsub.f32 %v98_v11, %v2479_v15  ;;  %v2517_v11 = vsub.f32 %v97_v38, %v2491_v26 }
  0xb1   :  { %1041 = vmatpush.msrb.mxu2 %v2357_v48  ;;  %1093 = vmatpush.msrb.mxu3 %v2319_v27  ;;  %v980_v29 = vand.u32 4294901760, %v979_v1 }
  0xb2   :  { %1657 = vmatmul.msk.f32.gmra.mxu2 %vm46_vm7, %v2984_v19  ;;  %963 = vmatpush.msrb.mxu1 %v962_v20  ;;  %3037 = vst [vmem:[#allocation9_spill] sm:$0xff] %v2504_v62  ;;  %v991_v20 = vsub.f32 %v2463_v37, %v2966_v6  ;;  %v2971_v1 = vand.u32 4294901760, %v2504_v62  ;;  %v128_v6 = vld [vmem:[#allocation2 + $0x1f8] sm:$0xff]  ;;  %v2974_v44 = vand.u32 4294901760, %v2517_v11 }
  0xb3   :  { %878 = vmatpush.msrb.mxu0 %v2300_v28  ;;  %1044 = vmatpush.msrb.mxu2 %v2379_v3  ;;  %3038 = vst [vmem:[#allocation10_spill] sm:$0xff] %v2517_v11 }
  0xb4   :  { %1095 = vmatpush.msrb.mxu3 %v2335_v33  ;;  %969 = vmatpush.msrb.mxu1 %v968_v30  ;;  %v997_v30 = vsub.f32 %v2477_v9, %v2968_v41  ;;  %v992_v38 = vand.u32 4294901760, %v991_v20  ;;  %v2535_v41 = vand.u32 4294901760, %v128_v6  ;;  %v126_v20 = vld [vmem:[#allocation2 + $0x1e8] sm:$0xff] }
  0xb5   :  { %1659 = vmatmul.msk.f32.gmra.mxu3 %vm46_vm7, %v2984_v19  ;;  %880 = vmatpush.msrb.mxu0 %v2319_v27  ;;  %v2555_v47 = vand.u32 4294901760, %v126_v20 }
  0xb6   :  { %1047 = vmatpush.msrb.mxu2 %v2390_v54  ;;  %1097 = vmatpush.msrb.mxu3 %v2351_v63  ;;  %v998_v46 = vand.u32 4294901760, %v997_v30  ;;  %v2552_v30 = vsub.f32 %v128_v6, %v2535_v41  ;;  %v124_v6 = vld [vmem:[#allocation2 + $0x1d8] sm:$0xff] }
  0xb7   :  { %975 = vmatpush.msrb.mxu1 %v974_v39  ;;  %882 = vmatpush.msrb.mxu0 %v2335_v33  ;;  %v1003_v39 = vsub.f32 %v2489_v35, %v2970_v21  ;;  %v2577_v13 = vand.u32 4294901760, %v124_v6 }
  0xb8   :  { %1050 = vmatpush.msrb.mxu2 %v2406_v59  ;;  %1099 = vmatpush.msrb.mxu3 %v2364_v42 }
  0xb9   :  { %710 = vmatmul.f32.gmra.mxu0 %v2275_v17  ;;  %981 = vmatpush.msrb.mxu1 %v980_v29  ;;  %v1009_v17 = vsub.f32 %v2504_v62, %v2971_v1  ;;  %v2543_v29 = vand.u32 4294901760, %v127_v4  ;;  %v1004_v21 = vand.u32 4294901760, %v1003_v39 }
  0xba   :  { %884 = vmatpush.msrb.mxu0 %v2351_v63  ;;  %1053 = vmatpush.msrb.mxu2 %v2424_v23 }
  0xbb   :  { %1101 = vmatpush.msrb.mxu3 %v2381_v51  ;;  %987 = vmatpush.msrb.mxu1 %v986_v58  ;;  %v1015_v58 = vsub.f32 %v2517_v11, %v2974_v44  ;;  %v1010_v1 = vand.u32 4294901760, %v1009_v17  ;;  %v2566_v17 = vand.u32 4294901760, %v125_v40  ;;  %v2572_v44 = vsub.f32 %v126_v20, %v2555_v47 }
  0xbc   :  { %886 = vmatpush.msrb.mxu0 %v2364_v42  ;;  %1056 = vmatpush.msrb.mxu2 %v2436_v5 }
  0xbd   :  { %1103 = vmatpush.msrb.mxu3 %v2399_v49  ;;  %993 = vmatpush.msrb.mxu1 %v992_v38  ;;  %v2560_v38 = vsub.f32 %v127_v4, %v2543_v29  ;;  %v1016_v39 = vand.u32 4294901760, %v1015_v58  ;;  %v906_v4 = vsub.f32 %v2204_v16, %v2204_v16  ;;  %3040 = vst [vmem:[#allocation12_spill] sm:$0xff] %v2572_v44  ;;  %v2987_v36 = vand.u32 4294901760, %v2572_v44 }
  0xbe   :  { %888 = vmatpush.msrb.mxu0 %v2381_v51  ;;  %1059 = vmatpush.msrb.mxu2 %v2451_v0 }
  0xbf   :  { %1105 = vmatpush.msrb.mxu3 %v2414_v34  ;;  %999 = vmatpush.msrb.mxu1 %v998_v46  ;;  %3039 = vst [vmem:[#allocation11_spill] sm:$0xff] %v2560_v38  ;;  %v2978_v46 = vand.u32 4294901760, %v2552_v30  ;;  %v2983_v58 = vand.u32 4294901760, %v2560_v38 }
  0xc0   :  { %890 = vmatpush.msrb.mxu0 %v2399_v49  ;;  %1062 = vmatpush.msrb.mxu2 %v2463_v37 }
  0xc1   :  { %1107 = vmatpush.msrb.mxu3 %v2426_v32  ;;  %1005 = vmatpush.msrb.mxu1 %v1004_v21  ;;  %v123_v21 = vld [vmem:[#allocation2 + $0x1d0] sm:$0xff]  ;;  %v1297_v16 = vsub.f32 %v2552_v30, %v2978_v46  ;;  %v1303_v46 = vsub.f32 %v2560_v38, %v2983_v58  ;;  %v120_v58 = vld [vmem:[#allocation2 + $0x1b8] sm:$0xff]  ;;  %v3046_v38 = vmov 1.0  }
  0xc2   :  { %892 = vmatpush.msrb.mxu0 %v2414_v34  ;;  %1065 = vmatpush.msrb.mxu2 %v2477_v9  ;;  %v2591_v20 = vand.u32 4294901760, %v123_v21 }
  0xc3   :  { %1109 = vmatpush.msrb.mxu3 %v2438_v12  ;;  %1011 = vmatpush.msrb.mxu1 %v1010_v1  ;;  %v2589_v1 = vsub.f32 %v125_v40, %v2566_v17  ;;  %v2602_v40 = vsub.f32 %v124_v6, %v2577_v13 }
  0xc4   :  { %894 = vmatpush.msrb.mxu0 %v2426_v32  ;;  %1068 = vmatpush.msrb.mxu2 %v2489_v35  ;;  %v2611_v7 = vsub.f32 %v123_v21, %v2591_v20  ;;  %v914_v21 = vsub.f32 %v2251_v55, %v2251_v55 }
  0xc5   :  { %1111 = vmatpush.msrb.mxu3 %v2453_v24  ;;  %1017 = vmatpush.msrb.mxu1 %v1016_v39  ;;  %3041 = vst [vmem:[#allocation13_spill] sm:$0xff] %v2589_v1  ;;  %v907_v39 = vand.u32 4294901760, %v906_v4 }
  0xc6   :  { %896 = vmatpush.msrb.mxu0 %v2438_v12  ;;  %1660 = vmatmul.msk.f32.vlgmr.msrb.gmra.mxu1 %vm43_vm3, %v2984_v19  ;;  %3042 = vst [vmem:[#allocation14_spill] sm:$0xff] %v2602_v40  ;;  %v1309_v19 = vsub.f32 %v2572_v44, %v2987_v36  ;;  %v2629_v36 = vand.u32 4294901760, %v120_v58  ;;  %v118_v44 = vld [vmem:[#allocation2 + $0x1a8] sm:$0xff] }
  0xc7   :  { %1071 = vmatpush.msrb.mxu2 %v2504_v62  ;;  %1113 = vmatpush.msrb.mxu3 %v2465_v61  ;;  %3043 = vst [vmem:[#allocation15_spill] sm:$0xff] %v2611_v7  ;;  %v908_v6 = vsub.f32 %v906_v4, %v907_v39 }
  0xc8   :  { %1205 = vmatpush.msra.mxu1 %v2281_v2  ;;  %898 = vmatpush.msrb.mxu0 %v2453_v24  ;;  %v1298_v2 = vand.u32 4294901760, %v1297_v16 }
  0xc9   :  { %1074 = vmatpush.msrb.mxu2 %v2517_v11  ;;  %1115 = vmatpush.msrb.mxu3 %v2479_v15  ;;  %v2618_v11 = vand.u32 4294901760, %v121_v43  ;;  %v909_v10 = vand.u32 4294901760, %v908_v6  ;;  %v3047_v6 = vand.u32 4294901760, %v2296_v45 }
  0xca   :  { %1207 = vmatpush.msra.mxu1 %v2290_v57  ;;  %1077 = vmatmul.f32.vlgmr.msrb.gmra.mxu2 %v906_v4  ;;  %v1304_v57 = vand.u32 4294901760, %v1303_v46  ;;  %v119_v4 = vld [vmem:[#allocation2 + $0x1b0] sm:$0xff] }
  0xcb   :  { %1246 = vmatpush.msra.mxu2 %v2535_v41  ;;  %900 = vmatpush.msrb.mxu0 %v2465_v61  ;;  %v2639_v16 = vsub.f32 %v121_v43, %v2618_v11  ;;  %v2641_v62 = vand.u32 4294901760, %v119_v4  ;;  %v2655_v43 = vand.u32 4294901760, %v118_v44 }
  0xcc   :  { %1117 = vmatpush.msrb.mxu3 %v2491_v26  ;;  %1209 = vmatpush.msra.mxu1 %v2300_v28  ;;  %v3044_v28 = vand.u32 4294901760, %v2589_v1 }
  0xcd   :  { %1121 = vmatmul.f32.vlgmr.msrb.gmra.mxu3 %v907_v39  ;;  %1248 = vmatpush.msra.mxu2 %v2543_v29  ;;  %v1310_v39 = vand.u32 4294901760, %v1309_v19  ;;  %v2653_v19 = vsub.f32 %v120_v58, %v2629_v36  ;;  %v2666_v58 = vsub.f32 %v119_v4, %v2641_v62 }
  0xce   :  { %1299 = vmatpush.msra.mxu3 %v1298_v2  ;;  %902 = vmatpush.msrb.mxu0 %v2479_v15  ;;  %v1315_v46 = vsub.f32 %v2589_v1, %v3044_v28  ;;  %v915_v2 = vand.u32 4294901760, %v914_v21  ;;  %v3045_v28 = vand.u32 4294901760, %v2602_v40 }
  0xcf   :  { %1211 = vmatpush.msra.mxu1 %v2319_v27  ;;  %1250 = vmatpush.msra.mxu2 %v2555_v47  ;;  %v117_v27 = vld [vmem:[#allocation2 + $0x1a0] sm:$0xff]  ;;  %v3085_v14 = vand.u32 4294901760, %v2666_v58 }
  0xd0   :  { %1305 = vmatpush.msra.mxu3 %v1304_v57  ;;  %904 = vmatpush.msrb.mxu0 %v2491_v26  ;;  %v1321_v55 = vsub.f32 %v2602_v40, %v3045_v28  ;;  %v1316_v57 = vand.u32 4294901760, %v1315_v46  ;;  %v3048_v28 = vand.u32 4294901760, %v2611_v7  ;;  %v116_v40 = vld [vmem:[#allocation2 + $0x198] sm:$0xff]  ;;  %v2668_v56 = vand.u32 4294901760, %v117_v27 }
  0xd1   :  { %1661 = vmatmul.msk.f32.gmra.mxu1 %vm47_vm6, %v3046_v38  ;;  %910 = vmatmul.f32.vlgmr.msrb.gmra.mxu0 %v909_v10  ;;  %v3049_v46 = vand.u32 4294901760, %v2626_v60  ;;  %v2681_v10 = vand.u32 4294901760, %v116_v40 }
  0xd2   :  { %1213 = vmatpush.msra.mxu1 %v2335_v33  ;;  %1134 = vmatpush.msra.mxu0 %v3047_v6  ;;  %v1327_v1 = vsub.f32 %v2611_v7, %v3048_v28  ;;  %v1322_v45 = vand.u32 4294901760, %v1321_v55  ;;  %v916_v33 = vsub.f32 %v914_v21, %v915_v2  ;;  %v115_v28 = vld [vmem:[#allocation2 + $0x190] sm:$0xff]  ;;  %v3050_v7 = vand.u32 4294901760, %v2314_v25 }
  0xd3   :  { %1252 = vmatpush.msra.mxu2 %v2566_v17  ;;  %1311 = vmatpush.msra.mxu3 %v1310_v39  ;;  %v1333_v6 = vsub.f32 %v2626_v60, %v3049_v46  ;;  %v2679_v39 = vsub.f32 %v118_v44, %v2655_v43  ;;  %v3051_v55 = vand.u32 4294901760, %v2325_v52  ;;  %v3052_v25 = vand.u32 4294901760, %v2639_v16  ;;  %v113_v46 = vld [vmem:[#allocation2 + $0x180] sm:$0xff] }
  0xd4   :  { %1215 = vmatpush.msra.mxu1 %v2351_v63  ;;  %1082 = vmatmul.f32.gmra.mxu2 %v914_v21  ;;  %v1328_v63 = vand.u32 4294901760, %v1327_v1  ;;  %v114_v21 = vld [vmem:[#allocation2 + $0x188] sm:$0xff]  ;;  %v2691_v44 = vsub.f32 %v117_v27, %v2668_v56  ;;  %v2693_v4 = vand.u32 4294901760, %v115_v28  ;;  %v3053_v52 = vand.u32 4294901760, %v2347_v8 }
  0xd5   :  { %1138 = vmatpush.msra.mxu0 %v3050_v7  ;;  %1254 = vmatpush.msra.mxu2 %v2577_v13  ;;  %v1339_v7 = vsub.f32 %v2639_v16, %v3052_v25  ;;  %v1334_v1 = vand.u32 4294901760, %v1333_v6  ;;  %v2704_v27 = vsub.f32 %v116_v40, %v2681_v10  ;;  %v2706_v25 = vand.u32 4294901760, %v114_v21 }
  0xd6   :  { %1317 = vmatpush.msra.mxu3 %v1316_v57  ;;  %1217 = vmatpush.msra.mxu1 %v2364_v42  ;;  %v917_v42 = vand.u32 4294901760, %v916_v33  ;;  %v1362_v33 = vand.u32 4294901760, %v2691_v44  ;;  %v2715_v6 = vsub.f32 %v115_v28, %v2693_v4  ;;  %v3056_v40 = vand.u32 4294901760, %v2357_v48 }
  0xd7   :  { %1127 = vmatmul.f32.gmra.mxu3 %v915_v2  ;;  %1142 = vmatpush.msra.mxu0 %v3051_v55  ;;  %v3054_v2 = vand.u32 4294901760, %v2653_v19  ;;  %v1356_v55 = vand.u32 4294901760, %v2679_v39  ;;  %v1340_v8 = vand.u32 4294901760, %v1339_v7  ;;  %v1368_v7 = vand.u32 4294901760, %v2704_v27 }
  0xd8   :  { %1256 = vmatpush.msra.mxu2 %v2591_v20  ;;  %1323 = vmatpush.msra.mxu3 %v1322_v45  ;;  %v2728_v28 = vsub.f32 %v114_v21, %v2706_v25  ;;  %v3057_v48 = vand.u32 4294901760, %v2379_v3  ;;  %v3058_v21 = vand.u32 4294901760, %v2390_v54 }
  0xd9   :  { %1219 = vmatpush.msra.mxu1 %v2381_v51  ;;  %1146 = vmatpush.msra.mxu0 %v3053_v52  ;;  %v1345_v57 = vsub.f32 %v2653_v19, %v3054_v2  ;;  %v3055_v51 = vand.u32 4294901760, %v2666_v58  ;;  %v2720_v52 = vand.u32 4294901760, %v113_v46  ;;  %v2740_v2 = vsub.f32 %v2193_v53, %v2193_v53 }
  0xda   :  { %1258 = vmatpush.msra.mxu2 %v2604_v22  ;;  %1329 = vmatpush.msra.mxu3 %v1328_v63  ;;  %v1357_v63 = vsub.f32 %v2679_v39, %v1356_v55  ;;  %v3059_v53 = vand.u32 4294901760, %v2406_v59 }
  0xdb   :  { %1221 = vmatpush.msra.mxu1 %v2399_v49  ;;  %918 = vmatmul.f32.gmra.mxu0 %v917_v42  ;;  %v1351_v45 = vsub.f32 %v2666_v58, %v3055_v51  ;;  %v1346_v49 = vand.u32 4294901760, %v1345_v57  ;;  %v2746_v3 = vsub.f32 %v113_v46, %v2720_v52  ;;  %v1369_v57 = vsub.f32 %v2704_v27, %v1368_v7 }
  0xdc   :  { %1150 = vmatpush.msra.mxu0 %v3056_v40  ;;  %1260 = vmatpush.msra.mxu2 %v2618_v11  ;;  %v3060_v46 = vand.u32 4294901760, %v2424_v23  ;;  %v1279_v51 = vand.u32 4294901760, %v2740_v2  ;;  %v3061_v40 = vand.u32 4294901760, %v2436_v5 }
  0xdd   :  { %1335 = vmatpush.msra.mxu3 %v1334_v1  ;;  %1223 = vmatpush.msra.mxu1 %v2414_v34  ;;  %v1352_v42 = vand.u32 4294901760, %v1351_v45  ;;  %v1363_v34 = vsub.f32 %v2691_v44, %v1362_v33  ;;  %v1374_v1 = vand.u32 4294901760, %v2715_v6  ;;  %v1386_v59 = vand.u32 4294901760, %v2746_v3 }
  0xde   :  { %1154 = vmatpush.msra.mxu0 %v3057_v48  ;;  %1262 = vmatpush.msra.mxu2 %v2629_v36  ;;  %v1370_v45 = vand.u32 4294901760, %v1369_v57 }
  0xdf   :  { %1341 = vmatpush.msra.mxu3 %v1340_v8  ;;  %1225 = vmatpush.msra.mxu1 %v2426_v32  ;;  %v1358_v32 = vand.u32 4294901760, %v1357_v63  ;;  %v1380_v8 = vand.u32 4294901760, %v2728_v28  ;;  %v1364_v54 = vand.u32 4294901760, %v1363_v34  ;;  %v1387_v5 = vsub.f32 %v2746_v3, %v1386_v59 }
  0xe0   :  { %1158 = vmatpush.msra.mxu0 %v3058_v21  ;;  %1264 = vmatpush.msra.mxu2 %v2641_v62  ;;  %v3066_v34 = vand.u32 4294901760, %v2489_v35 }
  0xe1   :  { %1347 = vmatpush.msra.mxu3 %v1346_v49  ;;  %1227 = vmatpush.msra.mxu1 %v2438_v12  ;;  %v1375_v12 = vsub.f32 %v2715_v6, %v1374_v1  ;;  %v3062_v49 = vand.u32 4294901760, %v2451_v0  ;;  %v2791_v0 = vsub.f32 %v2270_v50, %v2270_v50  ;;  %v3065_v50 = vand.u32 4294901760, %v2552_v30 }
  0xe2   :  { %1162 = vmatpush.msra.mxu0 %v3059_v53  ;;  %1266 = vmatpush.msra.mxu2 %v2655_v43  ;;  %v3071_v53 = vld [vmem:[#allocation12_spill] sm:$0xff] }
  0xe3   :  { %1353 = vmatpush.msra.mxu3 %v1352_v42  ;;  %1229 = vmatpush.msra.mxu1 %v2453_v24  ;;  %v1381_v24 = vsub.f32 %v2728_v28, %v1380_v8  ;;  %v1376_v23 = vand.u32 4294901760, %v1375_v12  ;;  %v1287_v42 = vand.u32 4294901760, %v2791_v0  ;;  %v3073_v12 = vld [vmem:[#allocation10_spill] sm:$0xff] }
  0xe4   :  { %1166 = vmatpush.msra.mxu0 %v3060_v46  ;;  %1268 = vmatpush.msra.mxu2 %v2668_v56  ;;  %v3074_v46 = vand.u32 4294901760, %v3073_v12 }
  0xe5   :  { %1359 = vmatpush.msra.mxu3 %v1358_v32  ;;  %1231 = vmatpush.msra.mxu1 %v2465_v61  ;;  %v1280_v61 = vsub.f32 %v2740_v2, %v1279_v51  ;;  %v1382_v63 = vand.u32 4294901760, %v1381_v24  ;;  %v3069_v32 = vld [vmem:[#allocation9_spill] sm:$0xff]  ;;  %v1288_v35 = vsub.f32 %v2791_v0, %v1287_v42 }
  0xe6   :  { %1170 = vmatpush.msra.mxu0 %v3061_v40  ;;  %1270 = vmatpush.msra.mxu2 %v2681_v10  ;;  %v3070_v57 = vand.u32 4294901760, %v3069_v32  ;;  %v3076_v24 = vld [vmem:[#allocation13_spill] sm:$0xff]  ;;  %v3078_v40 = vld [vmem:[#allocation14_spill] sm:$0xff] }
  0xe7   :  { %1365 = vmatpush.msra.mxu3 %v1364_v54  ;;  %1233 = vmatpush.msra.mxu1 %v2479_v15  ;;  %v3063_v15 = vand.u32 4294901760, %v2463_v37  ;;  %v1281_v48 = vand.u32 4294901760, %v1280_v61  ;;  %v1388_v37 = vand.u32 4294901760, %v1387_v5  ;;  %v3072_v54 = vand.u32 4294901760, %v3071_v53 }
  0xe8   :  { %1174 = vmatpush.msra.mxu0 %v3062_v49  ;;  %1272 = vmatpush.msra.mxu2 %v2693_v4 }
  0xe9   :  { %1371 = vmatpush.msra.mxu3 %v1370_v45  ;;  %1235 = vmatpush.msra.mxu1 %v2491_v26  ;;  %v3064_v26 = vand.u32 4294901760, %v2477_v9  ;;  %v3067_v9 = vld [vmem:[#allocation11_spill] sm:$0xff] }
  0xea   :  { %1178 = vmatpush.msra.mxu0 %v3063_v15  ;;  %1664 = vmatmul.msk.f32.vlgmr.msra.gmra.mxu1 %vm43_vm3, %v3046_v38  ;;  %v3068_v21 = vand.u32 4294901760, %v3067_v9 }
  0xeb   :  { %1274 = vmatpush.msra.mxu2 %v2706_v25  ;;  %1377 = vmatpush.msra.mxu3 %v1376_v23  ;;  %v3079_v23 = vand.u32 4294901760, %v3078_v40 }
  0xec   :  { %1459 = vmatpush.msrb.mxu1 %v2535_v41  ;;  %1182 = vmatpush.msra.mxu0 %v3064_v26 }
  0xed   :  { %1276 = vmatpush.msra.mxu2 %v2720_v52  ;;  %1383 = vmatpush.msra.mxu3 %v1382_v63 }
  0xee   :  { %1461 = vmatpush.msrb.mxu1 %v2543_v29  ;;  %1282 = vmatmul.f32.vlgmr.msra.gmra.mxu2 %v1281_v48 }
  0xef   :  { %1506 = vmatpush.msrb.mxu2 %v3065_v50  ;;  %1186 = vmatpush.msra.mxu0 %v3066_v34 }
  0xf0   :  { %1389 = vmatpush.msra.mxu3 %v1388_v37  ;;  %1463 = vmatpush.msrb.mxu1 %v2555_v47 }
  0xf1   :  { %1666 = vmatmul.msk.f32.vlgmr.msra.gmra.mxu3 %vm44_vm1, %v3046_v38  ;;  %1510 = vmatpush.msrb.mxu2 %v3068_v21 }
  0xf2   :  { %1577 = vmatpush.msrb.mxu3 %v2535_v41  ;;  %1190 = vmatpush.msra.mxu0 %v3070_v57  ;;  %v1289_v41 = vand.u32 4294901760, %v1288_v35 }
  0xf3   :  { %1465 = vmatpush.msrb.mxu1 %v2566_v17  ;;  %1514 = vmatpush.msrb.mxu2 %v3072_v54 }
  0xf4   :  { %1579 = vmatpush.msrb.mxu3 %v2543_v29  ;;  %1194 = vmatpush.msra.mxu0 %v3074_v46  ;;  %v3077_v29 = vand.u32 4294901760, %v3076_v24 }
  0xf5   :  { %1665 = vmatmul.msk.f32.gmra.mxu1 %vm47_vm6, %v3046_v38  ;;  %1662 = vmatmul.msk.f32.vlgmr.msra.gmra.mxu0 %vm43_vm3, %v3046_v38 }
  0xf6   :  { %1467 = vmatpush.msrb.mxu1 %v2577_v13  ;;  %1401 = vmatpush.msrb.mxu0 %v2552_v30 }
  0xf7   :  { %1518 = vmatpush.msrb.mxu2 %v3077_v29  ;;  %1581 = vmatpush.msrb.mxu3 %v2555_v47  ;;  %v3080_v47 = vld [vmem:[#allocation15_spill] sm:$0xff] }
  0xf8   :  { %1469 = vmatpush.msrb.mxu1 %v2591_v20  ;;  %1290 = vmatmul.f32.gmra.mxu2 %v1289_v41  ;;  %v3081_v30 = vand.u32 4294901760, %v3080_v47 }
  0xf9   :  { %1404 = vmatpush.msrb.mxu0 %v3067_v9  ;;  %1522 = vmatpush.msrb.mxu2 %v3079_v23  ;;  %v276_v31 = vpop.f32.mrf.mxu1 }
  0xfa   :  { %1583 = vmatpush.msrb.mxu3 %v2566_v17  ;;  %1471 = vmatpush.msrb.mxu1 %v2604_v22  ;;  %v3082_v17 = vand.u32 4294901760, %v2626_v60 }
  0xfb   :  { %1667 = vmatmul.msk.f32.gmra.mxu3 %vm48_vm4, %v3046_v38  ;;  %1407 = vmatpush.msrb.mxu0 %v3071_v53 }
  0xfc   :  { %1526 = vmatpush.msrb.mxu2 %v3081_v30  ;;  %1585 = vmatpush.msrb.mxu3 %v2577_v13  ;;  %v3083_v13 = vand.u32 4294901760, %v2639_v16 }
  0xfd   :  { %1473 = vmatpush.msrb.mxu1 %v2618_v11  ;;  %1410 = vmatpush.msrb.mxu0 %v3076_v24 }
  0xfe   :  { %1530 = vmatpush.msrb.mxu2 %v3082_v17  ;;  %1587 = vmatpush.msrb.mxu3 %v2591_v20  ;;  %v3084_v20 = vand.u32 4294901760, %v2653_v19 }
  0xff   :  { %1475 = vmatpush.msrb.mxu1 %v2629_v36  ;;  %1663 = vmatmul.msk.f32.gmra.mxu0 %vm47_vm6, %v3046_v38 }
 0x100   :  { %1413 = vmatpush.msrb.mxu0 %v3078_v40  ;;  %1534 = vmatpush.msrb.mxu2 %v3083_v13 }
 0x101   :  { %1589 = vmatpush.msrb.mxu3 %v2604_v22  ;;  %1477 = vmatpush.msrb.mxu1 %v2641_v62 }
 0x102   :  { %1416 = vmatpush.msrb.mxu0 %v3080_v47  ;;  %1538 = vmatpush.msrb.mxu2 %v3084_v20 }
 0x103   :  { %1591 = vmatpush.msrb.mxu3 %v2618_v11  ;;  %1479 = vmatpush.msrb.mxu1 %v2655_v43 }
 0x104   :  { %1419 = vmatpush.msrb.mxu0 %v2626_v60  ;;  %1542 = vmatpush.msrb.mxu2 %v3085_v14  ;;  %v334_v60 = vpop.f32.mrf.mxu2  ;;  %v378_v22 = vpop.f32.mrf.mxu3 }
 0x105   :  { %1593 = vmatpush.msrb.mxu3 %v2629_v36  ;;  %1481 = vmatpush.msrb.mxu1 %v2668_v56  ;;  %v280_v36 = vpop.f32.mrf.mxu1 }
 0x106   :  { %1422 = vmatpush.msrb.mxu0 %v2639_v16  ;;  %1546 = vmatpush.msrb.mxu2 %v1356_v55 }
 0x107   :  { %1595 = vmatpush.msrb.mxu3 %v2641_v62  ;;  %1483 = vmatpush.msrb.mxu1 %v2681_v10 }
 0x108   :  { %1425 = vmatpush.msrb.mxu0 %v2653_v19  ;;  %1550 = vmatpush.msrb.mxu2 %v1362_v33 }
 0x109   :  { %1597 = vmatpush.msrb.mxu3 %v2655_v43  ;;  %1485 = vmatpush.msrb.mxu1 %v2693_v4 }
 0x10a   :  { %1428 = vmatpush.msrb.mxu0 %v2666_v58  ;;  %1554 = vmatpush.msrb.mxu2 %v1368_v7 }
 0x10b   :  { %1599 = vmatpush.msrb.mxu3 %v2668_v56  ;;  %1487 = vmatpush.msrb.mxu1 %v2706_v25  ;;  %v167_v56 = vpop.f32.mrf.mxu0 }
 0x10c   :  { %1431 = vmatpush.msrb.mxu0 %v2679_v39  ;;  %1558 = vmatpush.msrb.mxu2 %v1374_v1  ;;  %v339_v11 = vpop.f32.mrf.mxu2 }
 0x10d   :  { %1601 = vmatpush.msrb.mxu3 %v2681_v10  ;;  %1489 = vmatpush.msrb.mxu1 %v2720_v52  ;;  %v494_v19 = vpop.f32.mrf.mxu1 }
 0x10e   :  { %1434 = vmatpush.msrb.mxu0 %v2691_v44  ;;  %1493 = vmatmul.f32.vlgmr.msrb.gmra.mxu1 %v1279_v51  ;;  %v384_v16 = vpop.f32.mrf.mxu3 }
 0x10f   :  { %1562 = vmatpush.msrb.mxu2 %v1380_v8  ;;  %1603 = vmatpush.msrb.mxu3 %v2693_v4  ;;  %v277_v4 = vadd.f32 %v276_v31, %v167_v56 }
 0x110   :  { %1437 = vmatpush.msrb.mxu0 %v2704_v27 }
 0x111   :  { %1566 = vmatpush.msrb.mxu2 %v1386_v59  ;;  %1605 = vmatpush.msrb.mxu3 %v2706_v25  ;;  %v335_v18 = vadd.f32 %v334_v60, %v277_v4 }
 0x112   :  { %1668 = vmatmul.msk.f32.vlgmr.msrb.gmra.mxu2 %vm44_vm1, %v3046_v38  ;;  %1440 = vmatpush.msrb.mxu0 %v2715_v6 }
 0x113   :  { %1607 = vmatpush.msrb.mxu3 %v2720_v52  ;;  %v175_v62 = vpop.f32.mrf.mxu0  ;;  %v379_v27 = vadd.f32 %v378_v22, %v335_v18 }
 0x114   :  { %1670 = vmatmul.msk.f32.vlgmr.msrb.gmra.mxu3 %vm44_vm1, %v3046_v38  ;;  %1443 = vmatpush.msrb.mxu0 %v2728_v28  ;;  %v281_v25 = vadd.f32 %v280_v36, %v175_v62 }
 0x115   :  { %v539_v10 = vpop.f32.mrf.mxu2 }
 0x116   :  { %1446 = vmatpush.msrb.mxu0 %v2746_v3  ;;  %1499 = vmatmul.f32.gmra.mxu1 %v1287_v42  ;;  %v498_v39 = vpop.f32.mrf.mxu1  ;;  %v340_v7 = vadd.f32 %v339_v11, %v281_v25 }
 0x117   :  { %1449 = vmatmul.f32.vlgmr.msrb.gmra.mxu0 %v2740_v2 }
 0x118   :  { %v648_v58 = vpop.f32.mrf.mxu3  ;;  %v385_v3 = vadd.f32 %v384_v16, %v340_v7 }
 0x11a   :  { %1669 = vmatmul.msk.f32.gmra.mxu2 %vm48_vm4, %v3046_v38 }
 0x11b   :  { %v453_v43 = vpop.f32.mrf.mxu0 }
 0x11c   :  { %1671 = vmatmul.msk.f32.gmra.mxu3 %vm48_vm4, %v3046_v38  ;;  %v454_v33 = vadd.f32 %v453_v43, %v379_v27 }
 0x11e   :  { %v495_v1 = vadd.f32 %v494_v19, %v454_v33 }
 0x11f   :  { %1454 = vmatmul.f32.gmra.mxu0 %v2791_v0  ;;  %v547_v55 = vpop.f32.mrf.mxu2 }
 0x120   :  { %v540_v8 = vadd.f32 %v539_v10, %v495_v1 }
 0x121   :  { %v750_v6 = vpop.f32.mrf.mxu1 }
 0x122   :  { %v652_v38 = vpop.f32.mrf.mxu3  ;;  %v649_v61 = vadd.f32 %v648_v58, %v540_v8 }
 0x123   :  { %v457_v44 = vpop.f32.mrf.mxu0 }
 0x124   :  { %v458_v51 = vadd.f32 %v457_v44, %v385_v3 }
 0x126   :  { %v499_v5 = vadd.f32 %v498_v39, %v458_v51 }
 0x128   :  { %v548_v26 = vadd.f32 %v547_v55, %v499_v5 }
 0x12a   :  { %v653_v50 = vadd.f32 %v652_v38, %v548_v26 }
 0x12b   :  { %v825_v28 = vpop.f32.mrf.mxu2  ;;  %v756_v59 = vpop.f32.mrf.mxu1 }
 0x12c   :  { %v706_v52 = vpop.f32.mrf.mxu0 }
 0x12d   :  { %v866_v2 = vpop.f32.mrf.mxu3  ;;  %v707_v15 = vadd.f32 %v706_v52, %v649_v61 }
 0x12f   :  { %v751_v48 = vadd.f32 %v750_v6, %v707_v15 }
 0x131   :  { %v826_v9 = vadd.f32 %v825_v28, %v751_v48 }
 0x133   :  { %v867_v57 = vadd.f32 %v866_v2, %v826_v9 }
 0x135   :  { %v829_v63 = vpop.f32.mrf.mxu2 }
 0x136   :  { %v711_v49 = vpop.f32.mrf.mxu0 }
 0x137   :  { %v712_v21 = vadd.f32 %v711_v49, %v653_v50 }
 0x138   :  { %v870_v0 = vpop.f32.mrf.mxu3 }
 0x139   :  { %v757_v35 = vadd.f32 %v756_v59, %v712_v21 }
 0x13b   :  { %v830_v46 = vadd.f32 %v829_v63, %v757_v35 }
 0x13d   :  { %v871_v29 = vadd.f32 %v870_v0, %v830_v46 }
 0x143   :  { %v1020_v37 = vpop.f32.mrf.mxu1 }
 0x14d   :  { %v1078_v34 = vpop.f32.mrf.mxu2 }
 0x14e   :  { %v911_v42 = vpop.f32.mrf.mxu0  ;;  %v1024_v54 = vpop.f32.mrf.mxu1 }
 0x14f   :  { %v912_v53 = vadd.f32 %v911_v42, %v867_v57 }
 0x150   :  { %v1122_v32 = vpop.f32.mrf.mxu3 }
 0x151   :  { %v1021_v41 = vadd.f32 %v1020_v37, %v912_v53 }
 0x153   :  { %v1079_v40 = vadd.f32 %v1078_v34, %v1021_v41 }
 0x155   :  { %v1123_v13 = vadd.f32 %v1122_v32, %v1079_v40 }
 0x157   :  { %v1083_v45 = vpop.f32.mrf.mxu2 }
 0x158   :  { %v919_v12 = vpop.f32.mrf.mxu0 }
 0x159   :  { %v920_v23 = vadd.f32 %v919_v12, %v871_v29 }
 0x15a   :  { %v1128_v24 = vpop.f32.mrf.mxu3 }
 0x15b   :  { %v1025_v20 = vadd.f32 %v1024_v54, %v920_v23 }
 0x15d   :  { %v1084_v56 = vadd.f32 %v1083_v45, %v1025_v20 }
 0x15f   :  { %v1129_v62 = vadd.f32 %v1128_v24, %v1084_v56 }
 0x167   :  { %v1238_v47 = vpop.f32.mrf.mxu1 }
 0x171   :  { %v1283_v17 = vpop.f32.mrf.mxu2 }
 0x172   :  { %v1197_v30 = vpop.f32.mrf.mxu0  ;;  %v1242_v22 = vpop.f32.mrf.mxu1 }
 0x173   :  { %v1198_v31 = vadd.f32 %v1197_v30, %v1123_v13 }
 0x174   :  { %v1392_v14 = vpop.f32.mrf.mxu3 }
 0x175   :  { %v1239_v60 = vadd.f32 %v1238_v47, %v1198_v31 }
 0x177   :  { %v1284_v16 = vadd.f32 %v1283_v17, %v1239_v60 }
 0x179   :  { %v1393_v10 = vadd.f32 %v1392_v14, %v1284_v16 }
 0x17b   :  { %v1291_v11 = vpop.f32.mrf.mxu2 }
 0x17c   :  { %v1201_v36 = vpop.f32.mrf.mxu0 }
 0x17d   :  { %v1202_v19 = vadd.f32 %v1201_v36, %v1129_v62 }
 0x17e   :  { %v1396_v43 = vpop.f32.mrf.mxu3 }
 0x17f   :  { %v1243_v58 = vadd.f32 %v1242_v22, %v1202_v19 }
 0x181   :  { %v1292_v18 = vadd.f32 %v1291_v11, %v1243_v58 }
 0x183   :  { %v1397_v33 = vadd.f32 %v1396_v43, %v1292_v18 }
 0x18b   :  { %v1494_v4 = vpop.f32.mrf.mxu1 }
 0x193   :  { %v1500_v1 = vpop.f32.mrf.mxu1 }
 0x194   :  { %v1450_v39 = vpop.f32.mrf.mxu0 }
 0x195   :  { %v1451_v44 = vadd.f32 %v1450_v39, %v1393_v10  ;;  %v1569_v55 = vpop.f32.mrf.mxu2 }
 0x197   :  { %v1495_v38 = vadd.f32 %v1494_v4, %v1451_v44  ;;  %v1610_v27 = vpop.f32.mrf.mxu3 }
 0x199   :  { %v1570_v25 = vadd.f32 %v1569_v55, %v1495_v38 }
 0x19b   :  { %v1611_v6 = vadd.f32 %v1610_v27, %v1570_v25 }
 0x19c   :  { %v1455_v52 = vpop.f32.mrf.mxu0 }
 0x19d   :  { %v1617_v7 = vmul.f32 11.313708, %v1611_v6  ;;  %v1456_v28 = vadd.f32 %v1455_v52, %v1397_v33  ;;  %v1573_v3 = vpop.f32.mrf.mxu2 }
 0x19f   :  { %1619 = vst [vmem:[#allocation5] sm:$0xff] %v1617_v7  ;;  %v1501_v2 = vadd.f32 %v1500_v1, %v1456_v28  ;;  %v1614_v51 = vpop.f32.mrf.mxu3 }
 0x1a1   :  { %v1574_v8 = vadd.f32 %v1573_v3, %v1501_v2 }
 0x1a3   :  { %v1615_v59 = vadd.f32 %v1614_v51, %v1574_v8 }
 0x1a5   :  { %v1618_v49 = vmul.f32 11.313708, %v1615_v59 }
 0x1a7   :  { %1620 = vst [vmem:[#allocation5 + $0x8] sm:$0xff] %v1618_v49 }
 0x1a8   :  { %1633 = dma.vmem_to_hbm [thread:$0]  %s1626_s19, 256, %s1628_s22, [#allocation4], %s1733_s14, %s1733_s14, %s1734_s15  }
 0x1a9   :  { %1730 = dma.done.wait [#allocation4], 256  }
 0x1aa   :  { %1731 = vsyncadd [#allocation4], 4294967040 }
 0x1ab   :  { %1638 = vsyncpa [#allocation3], 1 }
 0x1ac   :  { %1639 = vsyncpa [#allocation4], 1 }

</bundles_post_ra>
